<compile_context>
chip_gen: v7x
topology: tpu7x:2x2x1
jax: 0.10.0
libtpu: 0.0.40
codegen_flags: <defaults>
</compile_context>

<pallas_src>
import math
import functools

import jax
import jax.numpy as jnp
from jax.experimental import pallas as pl
from jax.experimental.pallas import tpu as pltpu

D_MODEL = 32
NHEAD = 4
HEAD_DIM = D_MODEL // NHEAD
DIM_FF = 16


def _batch_mask(tq, tk, n_batch):
    """Valid (q, k) pairs: same batch element. Token row = seq*N + batch."""
    rb = jax.lax.broadcasted_iota(jnp.int32, (tq, tk), 0) % n_batch
    cb = jax.lax.broadcasted_iota(jnp.int32, (tq, tk), 1) % n_batch
    return rb == cb


def _attend(q, k, v, wo_t, bo, mask):
    """Multi-head attention on flattened tokens.

    q: (Tq, E), k/v: (Tk, E) with heads packed along lanes.
    wo_t: (E, E) = out_proj.weight.T, bo: (1, E).
    Output projection is folded per head (no concat).
    """
    scale = 1.0 / math.sqrt(HEAD_DIM)
    tq = q.shape[0]
    out = jnp.zeros((tq, D_MODEL), jnp.float32)
    for h in range(NHEAD):  # static, NHEAD=4
        lo = h * HEAD_DIM
        hi = lo + HEAD_DIM
        qh = q[:, lo:hi] * scale
        # scores: contract last dims of q_h and k_h (no explicit transpose).
        s = jax.lax.dot_general(
            qh, k[:, lo:hi],
            dimension_numbers=(((1,), (1,)), ((), ())),
            preferred_element_type=jnp.float32)                     # (Tq, Tk)
        s = jnp.where(mask, s, -1e30)
        s = s - jnp.max(s, axis=-1, keepdims=True)
        p = jnp.exp(s)
        p = p * pl.reciprocal(jnp.sum(p, axis=-1, keepdims=True), approx=True)
        oh = jnp.dot(p, v[:, lo:hi], preferred_element_type=jnp.float32)  # (Tq, Dh)
        out = out + jnp.dot(oh, wo_t[lo:hi, :],
                            preferred_element_type=jnp.float32)           # (Tq, E)
    return out + bo


def decoder_layer_kernel(x_ref, m_ref,
                         sa_wqkv_t_ref, sa_bqkv_ref, sa_wo_t_ref, sa_bo_ref,
                         ca_wq_t_ref, ca_bq_ref, ca_wkv_t_ref, ca_bkv_ref,
                         ca_wo_t_ref, ca_bo_ref,
                         w1_t_ref, b1_ref, w2_t_ref, b2_ref,
                         out_ref, *, n_batch):
    E = D_MODEL
    x = x_ref[...]     # (T, E)   T = L*N, token row = l*N + n
    mem = m_ref[...]   # (Ts, E)  Ts = S*N

    # ---- self-attention + residual (dropout1 identity, p=0) ----
    qkv = jnp.dot(x, sa_wqkv_t_ref[...],
                  preferred_element_type=jnp.float32) + sa_bqkv_ref[...]   # (T, 3E)
    mask_self = _batch_mask(x.shape[0], x.shape[0], n_batch)
    x = x + _attend(qkv[:, :E], qkv[:, E:2 * E], qkv[:, 2 * E:],
                    sa_wo_t_ref[...], sa_bo_ref[...], mask_self)

    # ---- cross-attention + residual (dropout2 identity, p=0) ----
    q = jnp.dot(x, ca_wq_t_ref[...],
                preferred_element_type=jnp.float32) + ca_bq_ref[...]       # (T, E)
    kv = jnp.dot(mem, ca_wkv_t_ref[...],
                 preferred_element_type=jnp.float32) + ca_bkv_ref[...]     # (Ts, 2E)
    mask_cross = _batch_mask(x.shape[0], mem.shape[0], n_batch)
    x = x + _attend(q, kv[:, :E], kv[:, E:],
                    ca_wo_t_ref[...], ca_bo_ref[...], mask_cross)

    # ---- feed-forward + residual (dropout / dropout3 identity, p=0) ----
    h = jnp.dot(x, w1_t_ref[...], preferred_element_type=jnp.float32) + b1_ref[...]
    h = jnp.maximum(h, 0.0)                                                # ReLU
    ff = jnp.dot(h, w2_t_ref[...], preferred_element_type=jnp.float32) + b2_ref[...]
    out_ref[...] = x + ff   # whole (T, E) slab in one store


def transformer_decoder_layer(tgt, memory, params):
    """tgt: (L, N, E), memory: (S, N, E) -> (L, N, E)  (PyTorch seq-first)."""
    L, N, E = tgt.shape
    S = memory.shape[0]
    T, Ts = L * N, S * N

    # Free reshapes only (no boundary transposes): tokens keep (seq, batch) order.
    x2d = tgt.reshape(T, E)
    m2d = memory.reshape(Ts, E)

    # Pre-pack / pre-transpose weights outside the kernel (one-time XLA ops).
    sa_wqkv_t = params["sa_in_w"].T          # (E, 3E)
    sa_bqkv = params["sa_in_b"]              # (1, 3E)
    sa_wo_t = params["sa_out_w"].T           # (E, E)
    sa_bo = params["sa_out_b"]               # (1, E)
    ca_wq_t = params["ca_in_w"][:E].T        # (E, E)
    ca_bq = params["ca_in_b"][:, :E]         # (1, E)
    ca_wkv_t = params["ca_in_w"][E:].T       # (E, 2E)
    ca_bkv = params["ca_in_b"][:, E:]        # (1, 2E)
    ca_wo_t = params["ca_out_w"].T           # (E, E)
    ca_bo = params["ca_out_b"]               # (1, E)
    w1_t = params["w1"].T                    # (E, F)
    b1 = params["b1"]                        # (1, F)
    w2_t = params["w2"].T                    # (F, E)
    b2 = params["b2"]                        # (1, E)

    operands = [x2d, m2d,
                sa_wqkv_t, sa_bqkv, sa_wo_t, sa_bo,
                ca_wq_t, ca_bq, ca_wkv_t, ca_bkv, ca_wo_t, ca_bo,
                w1_t, b1, w2_t, b2]

    def full_spec(a):
        nd = a.ndim
        return pl.BlockSpec(a.shape, lambda i, _nd=nd: (0,) * _nd)

    out = pl.pallas_call(
        functools.partial(decoder_layer_kernel, n_batch=N),
        out_shape=jax.ShapeDtypeStruct((T, E), jnp.float32),
        grid=(1,),   # single step: batch folded into the token dim
        in_specs=[full_spec(a) for a in operands],
        out_specs=pl.BlockSpec((T, E), lambda i: (0, 0)),
        compiler_params=pltpu.CompilerParams(dimension_semantics=("arbitrary",)),
    )(*operands)
    return out.reshape(L, N, E)


# ---------------- pure-JAX reference (mirrors PyTorch semantics) -------------
def ref_forward(tgt, memory, params):
    def mha(q_in, kv_in, in_w, in_b, out_w, out_b):
        E = D_MODEL
        q = q_in @ in_w[:E].T + in_b[0, :E]
        k = kv_in @ in_w[E:2 * E].T + in_b[0, E:2 * E]
        v = kv_in @ in_w[2 * E:].T + in_b[0, 2 * E:]
        Lq, Sk = q.shape[0], k.shape[0]
        qh = q.reshape(Lq, NHEAD, HEAD_DIM).transpose(1, 0, 2) / math.sqrt(HEAD_DIM)
        kh = k.reshape(Sk, NHEAD, HEAD_DIM).transpose(1, 0, 2)
        vh = v.reshape(Sk, NHEAD, HEAD_DIM).transpose(1, 0, 2)
        s = jnp.einsum("hld,hsd->hls", qh, kh)
        p = jax.nn.softmax(s, axis=-1)
        o = jnp.einsum("hls,hsd->hld", p, vh).transpose(1, 0, 2).reshape(Lq, E)
        return o @ out_w.T + out_b[0]

    def per_batch(x, mem):
        x = x + mha(x, x, params["sa_in_w"], params["sa_in_b"],
                    params["sa_out_w"], params["sa_out_b"])
        x = x + mha(x, mem, params["ca_in_w"], params["ca_in_b"],
                    params["ca_out_w"], params["ca_out_b"])
        ff = jnp.maximum(x @ params["w1"].T + params["b1"][0], 0.0) @ params["w2"].T + params["b2"][0]
        return x + ff

    tgt_b = jnp.transpose(tgt, (1, 0, 2))
    mem_b = jnp.transpose(memory, (1, 0, 2))
    out = jax.vmap(per_batch)(tgt_b, mem_b)
    return jnp.transpose(out, (1, 0, 2))


def init_params(key):
    ks = jax.random.split(key, 12)
    E, F = D_MODEL, DIM_FF

    def w(k, shape, fan_in):
        bound = 1.0 / math.sqrt(fan_in)
        return jax.random.uniform(k, shape, jnp.float32, -bound, bound)

    return {
        "sa_in_w":  w(ks[0], (3 * E, E), E),
        "sa_in_b":  w(ks[1], (1, 3 * E), E),
        "sa_out_w": w(ks[2], (E, E), E),
        "sa_out_b": w(ks[3], (1, E), E),
        "ca_in_w":  w(ks[4], (3 * E, E), E),
        "ca_in_b":  w(ks[5], (1, 3 * E), E),
        "ca_out_w": w(ks[6], (E, E), E),
        "ca_out_b": w(ks[7], (1, E), E),
        "w1":       w(ks[8], (F, E), E),
        "b1":       w(ks[9], (1, F), E),
        "w2":       w(ks[10], (E, F), F),
        "b2":       w(ks[11], (1, E), F),
    }


if __name__ == "__main__":
    key = jax.random.PRNGKey(0)
    k_p, k_tgt, k_mem = jax.random.split(key, 3)

    L, S, N = 8, 8, 2   # tgt seq, memory seq, batch
    params = init_params(k_p)
    tgt = jax.random.normal(k_tgt, (L, N, D_MODEL), jnp.float32)
    memory = jax.random.normal(k_mem, (S, N, D_MODEL), jnp.float32)

    out = transformer_decoder_layer(tgt, memory, params)
    out = jax.block_until_ready(out)

    ref = ref_forward(tgt, memory, params)
    assert out.shape == (L, N, D_MODEL)
    # approx reciprocal in the softmax -> slightly looser tolerance than exact div
    assert jnp.allclose(out, ref, atol=2e-3, rtol=2e-3), (
        float(jnp.max(jnp.abs(out - ref))))

    print("KERNEL_OK")
</pallas_src>

<mosaic_0001>
module attributes {stable_mosaic.version = 11 : i64} {
  func.func @decoder_layer_kernel(%arg0: i32, %arg1: memref<16x32xf32, #tpu.memory_space<vmem>>, %arg2: memref<16x32xf32, #tpu.memory_space<vmem>>, %arg3: memref<32x96xf32, #tpu.memory_space<vmem>>, %arg4: memref<1x96xf32, #tpu.memory_space<vmem>>, %arg5: memref<32x32xf32, #tpu.memory_space<vmem>>, %arg6: memref<1x32xf32, #tpu.memory_space<vmem>>, %arg7: memref<32x32xf32, #tpu.memory_space<vmem>>, %arg8: memref<1x32xf32, #tpu.memory_space<vmem>>, %arg9: memref<32x64xf32, #tpu.memory_space<vmem>>, %arg10: memref<1x64xf32, #tpu.memory_space<vmem>>, %arg11: memref<32x32xf32, #tpu.memory_space<vmem>>, %arg12: memref<1x32xf32, #tpu.memory_space<vmem>>, %arg13: memref<32x16xf32, #tpu.memory_space<vmem>>, %arg14: memref<1x16xf32, #tpu.memory_space<vmem>>, %arg15: memref<16x32xf32, #tpu.memory_space<vmem>>, %arg16: memref<1x32xf32, #tpu.memory_space<vmem>>, %arg17: memref<16x32xf32, #tpu.memory_space<vmem>>) attributes {dimension_semantics = [#tpu.dimension_semantics<arbitrary>], iteration_bounds = array<i64: 1>, scalar_prefetch = 0 : i64, scratch_operands = 0 : i64, tpu.core_type = #tpu.core_type<tc>, window_params = [{pipeline_mode = #tpu.pipeline_mode<synchronous>, transform_indices = @transform_0, window_bounds = array<i64: 16, 32>}, {pipeline_mode = #tpu.pipeline_mode<synchronous>, transform_indices = @transform_1, window_bounds = array<i64: 16, 32>}, {pipeline_mode = #tpu.pipeline_mode<synchronous>, transform_indices = @transform_2, window_bounds = array<i64: 32, 96>}, {pipeline_mode = #tpu.pipeline_mode<synchronous>, transform_indices = @transform_3, window_bounds = array<i64: 1, 96>}, {pipeline_mode = #tpu.pipeline_mode<synchronous>, transform_indices = @transform_4, window_bounds = array<i64: 32, 32>}, {pipeline_mode = #tpu.pipeline_mode<synchronous>, transform_indices = @transform_5, window_bounds = array<i64: 1, 32>}, {pipeline_mode = #tpu.pipeline_mode<synchronous>, transform_indices = @transform_6, window_bounds = array<i64: 32, 32>}, {pipeline_mode = #tpu.pipeline_mode<synchronous>, transform_indices = @transform_7, window_bounds = array<i64: 1, 32>}, {pipeline_mode = #tpu.pipeline_mode<synchronous>, transform_indices = @transform_8, window_bounds = array<i64: 32, 64>}, {pipeline_mode = #tpu.pipeline_mode<synchronous>, transform_indices = @transform_9, window_bounds = array<i64: 1, 64>}, {pipeline_mode = #tpu.pipeline_mode<synchronous>, transform_indices = @transform_10, window_bounds = array<i64: 32, 32>}, {pipeline_mode = #tpu.pipeline_mode<synchronous>, transform_indices = @transform_11, window_bounds = array<i64: 1, 32>}, {pipeline_mode = #tpu.pipeline_mode<synchronous>, transform_indices = @transform_12, window_bounds = array<i64: 32, 16>}, {pipeline_mode = #tpu.pipeline_mode<synchronous>, transform_indices = @transform_13, window_bounds = array<i64: 1, 16>}, {pipeline_mode = #tpu.pipeline_mode<synchronous>, transform_indices = @transform_14, window_bounds = array<i64: 16, 32>}, {pipeline_mode = #tpu.pipeline_mode<synchronous>, transform_indices = @transform_15, window_bounds = array<i64: 1, 32>}, {pipeline_mode = #tpu.pipeline_mode<synchronous>, transform_indices = @transform_16, window_bounds = array<i64: 16, 32>}]} {
    %c0 = arith.constant 0 : index
    %c0_0 = arith.constant 0 : index
    %0 = vector.load %arg1[%c0, %c0_0] : memref<16x32xf32, #tpu.memory_space<vmem>>, vector<16x32xf32>
    %c0_1 = arith.constant 0 : index
    %c0_2 = arith.constant 0 : index
    %1 = vector.load %arg2[%c0_1, %c0_2] : memref<16x32xf32, #tpu.memory_space<vmem>>, vector<16x32xf32>
    %c0_3 = arith.constant 0 : index
    %c0_4 = arith.constant 0 : index
    %2 = vector.load %arg3[%c0_3, %c0_4] : memref<32x96xf32, #tpu.memory_space<vmem>>, vector<32x96xf32>
    %cst = arith.constant dense<0.000000e+00> : vector<16x96xf32>
    %3 = tpu.matmul %0, %2, %cst {dimension_numbers = #tpu.dot_dimension_numbers<[1], [0], [0], [1], [0, 0, 1, 1], [], []>} : vector<16x32xf32>, vector<32x96xf32>, vector<16x96xf32> -> vector<16x96xf32>
    %c0_5 = arith.constant 0 : index
    %c0_6 = arith.constant 0 : index
    %4 = vector.load %arg4[%c0_5, %c0_6] : memref<1x96xf32, #tpu.memory_space<vmem>>, vector<1x96xf32>
    %5 = vector.broadcast %4 : vector<1x96xf32> to vector<16x96xf32>
    %6 = arith.addf %3, %5 : vector<16x96xf32>
    %7 = tpu.iota {dimensions = array<i32: 0>} : vector<16x16xi32>
    %c2_i32 = arith.constant 2 : i32
    %c0_i32 = arith.constant 0 : i32
    %8 = arith.cmpi eq, %c2_i32, %c0_i32 : i32
    %c1_i32 = arith.constant 1 : i32
    %9 = arith.select %8, %c1_i32, %c2_i32 : i32
    %10 = vector.broadcast %9 : i32 to vector<16x16xi32>
    %11 = arith.remsi %7, %10 : vector<16x16xi32>
    %c0_i32_7 = arith.constant 0 : i32
    %12 = vector.broadcast %c0_i32_7 : i32 to vector<16x16xi32>
    %13 = arith.cmpi ne, %11, %12 : vector<16x16xi32>
    %c0_i32_8 = arith.constant 0 : i32
    %14 = vector.broadcast %c0_i32_8 : i32 to vector<16x16xi32>
    %15 = arith.cmpi slt, %11, %14 : vector<16x16xi32>
    %c0_i32_9 = arith.constant 0 : i32
    %16 = arith.cmpi slt, %9, %c0_i32_9 : i32
    %17 = vector.broadcast %16 : i1 to vector<16x16xi1>
    %18 = vector.broadcast %17 : vector<16x16xi1> to vector<16x16xi1>
    %19 = arith.xori %15, %18 : vector<16x16xi1>
    %20 = arith.andi %19, %13 : vector<16x16xi1>
    %21 = vector.broadcast %9 : i32 to vector<16x16xi32>
    %22 = arith.addi %11, %21 : vector<16x16xi32>
    %23 = arith.select %20, %22, %11 : vector<16x16xi1>, vector<16x16xi32>
    %24 = tpu.iota {dimensions = array<i32: 1>} : vector<16x16xi32>
    %c2_i32_10 = arith.constant 2 : i32
    %c0_i32_11 = arith.constant 0 : i32
    %25 = arith.cmpi eq, %c2_i32_10, %c0_i32_11 : i32
    %c1_i32_12 = arith.constant 1 : i32
    %26 = arith.select %25, %c1_i32_12, %c2_i32_10 : i32
    %27 = vector.broadcast %26 : i32 to vector<16x16xi32>
    %28 = arith.remsi %24, %27 : vector<16x16xi32>
    %c0_i32_13 = arith.constant 0 : i32
    %29 = vector.broadcast %c0_i32_13 : i32 to vector<16x16xi32>
    %30 = arith.cmpi ne, %28, %29 : vector<16x16xi32>
    %c0_i32_14 = arith.constant 0 : i32
    %31 = vector.broadcast %c0_i32_14 : i32 to vector<16x16xi32>
    %32 = arith.cmpi slt, %28, %31 : vector<16x16xi32>
    %c0_i32_15 = arith.constant 0 : i32
    %33 = arith.cmpi slt, %26, %c0_i32_15 : i32
    %34 = vector.broadcast %33 : i1 to vector<16x16xi1>
    %35 = vector.broadcast %34 : vector<16x16xi1> to vector<16x16xi1>
    %36 = arith.xori %32, %35 : vector<16x16xi1>
    %37 = arith.andi %36, %30 : vector<16x16xi1>
    %38 = vector.broadcast %26 : i32 to vector<16x16xi32>
    %39 = arith.addi %28, %38 : vector<16x16xi32>
    %40 = arith.select %37, %39, %28 : vector<16x16xi1>, vector<16x16xi32>
    %41 = arith.cmpi eq, %23, %40 : vector<16x16xi32>
    %42 = vector.extract_strided_slice %6 {offsets = [0, 0], sizes = [16, 32], strides = [1, 1]} : vector<16x96xf32> to vector<16x32xf32>
    %43 = vector.extract_strided_slice %6 {offsets = [0, 32], sizes = [16, 32], strides = [1, 1]} : vector<16x96xf32> to vector<16x32xf32>
    %44 = vector.extract_strided_slice %6 {offsets = [0, 64], sizes = [16, 32], strides = [1, 1]} : vector<16x96xf32> to vector<16x32xf32>
    %c0_16 = arith.constant 0 : index
    %c0_17 = arith.constant 0 : index
    %45 = vector.load %arg5[%c0_16, %c0_17] : memref<32x32xf32, #tpu.memory_space<vmem>>, vector<32x32xf32>
    %c0_18 = arith.constant 0 : index
    %c0_19 = arith.constant 0 : index
    %46 = vector.load %arg6[%c0_18, %c0_19] : memref<1x32xf32, #tpu.memory_space<vmem>>, vector<1x32xf32>
    %cst_20 = arith.constant 0.000000e+00 : f32
    %47 = vector.broadcast %cst_20 : f32 to vector<16x32xf32>
    %48 = vector.extract_strided_slice %42 {offsets = [0, 0], sizes = [16, 8], strides = [1, 1]} : vector<16x32xf32> to vector<16x8xf32>
    %cst_21 = arith.constant 0.353553385 : f32
    %49 = vector.broadcast %cst_21 : f32 to vector<16x8xf32>
    %50 = arith.mulf %48, %49 : vector<16x8xf32>
    %51 = vector.extract_strided_slice %43 {offsets = [0, 0], sizes = [16, 8], strides = [1, 1]} : vector<16x32xf32> to vector<16x8xf32>
    %cst_22 = arith.constant dense<0.000000e+00> : vector<16x16xf32>
    %52 = tpu.matmul %50, %51, %cst_22 {dimension_numbers = #tpu.dot_dimension_numbers<[1], [1], [0], [0], [0, 0, 1, 0], [], []>} : vector<16x8xf32>, vector<16x8xf32>, vector<16x16xf32> -> vector<16x16xf32>
    %cst_23 = arith.constant -1.000000e+30 : f32
    %53 = vector.broadcast %cst_23 : f32 to vector<16x16xf32>
    %54 = arith.select %41, %52, %53 : vector<16x16xi1>, vector<16x16xf32>
    %cst_24 = arith.constant dense<0xFF800000> : vector<16xf32>
    %55 = vector.multi_reduction <maximumf>, %54, %cst_24 [1] : vector<16x16xf32> to vector<16xf32>
    %56 = vector.shape_cast %55 : vector<16xf32> to vector<16x1xf32>
    %57 = vector.broadcast %56 : vector<16x1xf32> to vector<16x16xf32>
    %58 = arith.subf %54, %57 : vector<16x16xf32>
    %59 = math.exp %58 : vector<16x16xf32>
    %cst_25 = arith.constant dense<0.000000e+00> : vector<16xf32>
    %60 = vector.multi_reduction <add>, %59, %cst_25 [1] : vector<16x16xf32> to vector<16xf32>
    %61 = vector.shape_cast %60 : vector<16xf32> to vector<16x1xf32>
    %62 = tpu.reciprocal %61 {approx = true} : vector<16x1xf32> -> vector<16x1xf32>
    %63 = vector.broadcast %62 : vector<16x1xf32> to vector<16x16xf32>
    %64 = arith.mulf %59, %63 : vector<16x16xf32>
    %65 = vector.extract_strided_slice %44 {offsets = [0, 0], sizes = [16, 8], strides = [1, 1]} : vector<16x32xf32> to vector<16x8xf32>
    %cst_26 = arith.constant dense<0.000000e+00> : vector<16x8xf32>
    %66 = tpu.matmul %64, %65, %cst_26 {dimension_numbers = #tpu.dot_dimension_numbers<[1], [0], [0], [1], [0, 0, 1, 1], [], []>} : vector<16x16xf32>, vector<16x8xf32>, vector<16x8xf32> -> vector<16x8xf32>
    %67 = vector.extract_strided_slice %45 {offsets = [0, 0], sizes = [8, 32], strides = [1, 1]} : vector<32x32xf32> to vector<8x32xf32>
    %cst_27 = arith.constant dense<0.000000e+00> : vector<16x32xf32>
    %68 = tpu.matmul %66, %67, %cst_27 {dimension_numbers = #tpu.dot_dimension_numbers<[1], [0], [0], [1], [0, 0, 1, 1], [], []>} : vector<16x8xf32>, vector<8x32xf32>, vector<16x32xf32> -> vector<16x32xf32>
    %69 = arith.addf %47, %68 : vector<16x32xf32>
    %70 = vector.extract_strided_slice %42 {offsets = [0, 8], sizes = [16, 8], strides = [1, 1]} : vector<16x32xf32> to vector<16x8xf32>
    %cst_28 = arith.constant 0.353553385 : f32
    %71 = vector.broadcast %cst_28 : f32 to vector<16x8xf32>
    %72 = arith.mulf %70, %71 : vector<16x8xf32>
    %73 = vector.extract_strided_slice %43 {offsets = [0, 8], sizes = [16, 8], strides = [1, 1]} : vector<16x32xf32> to vector<16x8xf32>
    %cst_29 = arith.constant dense<0.000000e+00> : vector<16x16xf32>
    %74 = tpu.matmul %72, %73, %cst_29 {dimension_numbers = #tpu.dot_dimension_numbers<[1], [1], [0], [0], [0, 0, 1, 0], [], []>} : vector<16x8xf32>, vector<16x8xf32>, vector<16x16xf32> -> vector<16x16xf32>
    %cst_30 = arith.constant -1.000000e+30 : f32
    %75 = vector.broadcast %cst_30 : f32 to vector<16x16xf32>
    %76 = arith.select %41, %74, %75 : vector<16x16xi1>, vector<16x16xf32>
    %cst_31 = arith.constant dense<0xFF800000> : vector<16xf32>
    %77 = vector.multi_reduction <maximumf>, %76, %cst_31 [1] : vector<16x16xf32> to vector<16xf32>
    %78 = vector.shape_cast %77 : vector<16xf32> to vector<16x1xf32>
    %79 = vector.broadcast %78 : vector<16x1xf32> to vector<16x16xf32>
    %80 = arith.subf %76, %79 : vector<16x16xf32>
    %81 = math.exp %80 : vector<16x16xf32>
    %cst_32 = arith.constant dense<0.000000e+00> : vector<16xf32>
    %82 = vector.multi_reduction <add>, %81, %cst_32 [1] : vector<16x16xf32> to vector<16xf32>
    %83 = vector.shape_cast %82 : vector<16xf32> to vector<16x1xf32>
    %84 = tpu.reciprocal %83 {approx = true} : vector<16x1xf32> -> vector<16x1xf32>
    %85 = vector.broadcast %84 : vector<16x1xf32> to vector<16x16xf32>
    %86 = arith.mulf %81, %85 : vector<16x16xf32>
    %87 = vector.extract_strided_slice %44 {offsets = [0, 8], sizes = [16, 8], strides = [1, 1]} : vector<16x32xf32> to vector<16x8xf32>
    %cst_33 = arith.constant dense<0.000000e+00> : vector<16x8xf32>
    %88 = tpu.matmul %86, %87, %cst_33 {dimension_numbers = #tpu.dot_dimension_numbers<[1], [0], [0], [1], [0, 0, 1, 1], [], []>} : vector<16x16xf32>, vector<16x8xf32>, vector<16x8xf32> -> vector<16x8xf32>
    %89 = vector.extract_strided_slice %45 {offsets = [8, 0], sizes = [8, 32], strides = [1, 1]} : vector<32x32xf32> to vector<8x32xf32>
    %cst_34 = arith.constant dense<0.000000e+00> : vector<16x32xf32>
    %90 = tpu.matmul %88, %89, %cst_34 {dimension_numbers = #tpu.dot_dimension_numbers<[1], [0], [0], [1], [0, 0, 1, 1], [], []>} : vector<16x8xf32>, vector<8x32xf32>, vector<16x32xf32> -> vector<16x32xf32>
    %91 = arith.addf %69, %90 : vector<16x32xf32>
    %92 = vector.extract_strided_slice %42 {offsets = [0, 16], sizes = [16, 8], strides = [1, 1]} : vector<16x32xf32> to vector<16x8xf32>
    %cst_35 = arith.constant 0.353553385 : f32
    %93 = vector.broadcast %cst_35 : f32 to vector<16x8xf32>
    %94 = arith.mulf %92, %93 : vector<16x8xf32>
    %95 = vector.extract_strided_slice %43 {offsets = [0, 16], sizes = [16, 8], strides = [1, 1]} : vector<16x32xf32> to vector<16x8xf32>
    %cst_36 = arith.constant dense<0.000000e+00> : vector<16x16xf32>
    %96 = tpu.matmul %94, %95, %cst_36 {dimension_numbers = #tpu.dot_dimension_numbers<[1], [1], [0], [0], [0, 0, 1, 0], [], []>} : vector<16x8xf32>, vector<16x8xf32>, vector<16x16xf32> -> vector<16x16xf32>
    %cst_37 = arith.constant -1.000000e+30 : f32
    %97 = vector.broadcast %cst_37 : f32 to vector<16x16xf32>
    %98 = arith.select %41, %96, %97 : vector<16x16xi1>, vector<16x16xf32>
    %cst_38 = arith.constant dense<0xFF800000> : vector<16xf32>
    %99 = vector.multi_reduction <maximumf>, %98, %cst_38 [1] : vector<16x16xf32> to vector<16xf32>
    %100 = vector.shape_cast %99 : vector<16xf32> to vector<16x1xf32>
    %101 = vector.broadcast %100 : vector<16x1xf32> to vector<16x16xf32>
    %102 = arith.subf %98, %101 : vector<16x16xf32>
    %103 = math.exp %102 : vector<16x16xf32>
    %cst_39 = arith.constant dense<0.000000e+00> : vector<16xf32>
    %104 = vector.multi_reduction <add>, %103, %cst_39 [1] : vector<16x16xf32> to vector<16xf32>
    %105 = vector.shape_cast %104 : vector<16xf32> to vector<16x1xf32>
    %106 = tpu.reciprocal %105 {approx = true} : vector<16x1xf32> -> vector<16x1xf32>
    %107 = vector.broadcast %106 : vector<16x1xf32> to vector<16x16xf32>
    %108 = arith.mulf %103, %107 : vector<16x16xf32>
    %109 = vector.extract_strided_slice %44 {offsets = [0, 16], sizes = [16, 8], strides = [1, 1]} : vector<16x32xf32> to vector<16x8xf32>
    %cst_40 = arith.constant dense<0.000000e+00> : vector<16x8xf32>
    %110 = tpu.matmul %108, %109, %cst_40 {dimension_numbers = #tpu.dot_dimension_numbers<[1], [0], [0], [1], [0, 0, 1, 1], [], []>} : vector<16x16xf32>, vector<16x8xf32>, vector<16x8xf32> -> vector<16x8xf32>
    %111 = vector.extract_strided_slice %45 {offsets = [16, 0], sizes = [8, 32], strides = [1, 1]} : vector<32x32xf32> to vector<8x32xf32>
    %cst_41 = arith.constant dense<0.000000e+00> : vector<16x32xf32>
    %112 = tpu.matmul %110, %111, %cst_41 {dimension_numbers = #tpu.dot_dimension_numbers<[1], [0], [0], [1], [0, 0, 1, 1], [], []>} : vector<16x8xf32>, vector<8x32xf32>, vector<16x32xf32> -> vector<16x32xf32>
    %113 = arith.addf %91, %112 : vector<16x32xf32>
    %114 = vector.extract_strided_slice %42 {offsets = [0, 24], sizes = [16, 8], strides = [1, 1]} : vector<16x32xf32> to vector<16x8xf32>
    %cst_42 = arith.constant 0.353553385 : f32
    %115 = vector.broadcast %cst_42 : f32 to vector<16x8xf32>
    %116 = arith.mulf %114, %115 : vector<16x8xf32>
    %117 = vector.extract_strided_slice %43 {offsets = [0, 24], sizes = [16, 8], strides = [1, 1]} : vector<16x32xf32> to vector<16x8xf32>
    %cst_43 = arith.constant dense<0.000000e+00> : vector<16x16xf32>
    %118 = tpu.matmul %116, %117, %cst_43 {dimension_numbers = #tpu.dot_dimension_numbers<[1], [1], [0], [0], [0, 0, 1, 0], [], []>} : vector<16x8xf32>, vector<16x8xf32>, vector<16x16xf32> -> vector<16x16xf32>
    %cst_44 = arith.constant -1.000000e+30 : f32
    %119 = vector.broadcast %cst_44 : f32 to vector<16x16xf32>
    %120 = arith.select %41, %118, %119 : vector<16x16xi1>, vector<16x16xf32>
    %cst_45 = arith.constant dense<0xFF800000> : vector<16xf32>
    %121 = vector.multi_reduction <maximumf>, %120, %cst_45 [1] : vector<16x16xf32> to vector<16xf32>
    %122 = vector.shape_cast %121 : vector<16xf32> to vector<16x1xf32>
    %123 = vector.broadcast %122 : vector<16x1xf32> to vector<16x16xf32>
    %124 = arith.subf %120, %123 : vector<16x16xf32>
    %125 = math.exp %124 : vector<16x16xf32>
    %cst_46 = arith.constant dense<0.000000e+00> : vector<16xf32>
    %126 = vector.multi_reduction <add>, %125, %cst_46 [1] : vector<16x16xf32> to vector<16xf32>
    %127 = vector.shape_cast %126 : vector<16xf32> to vector<16x1xf32>
    %128 = tpu.reciprocal %127 {approx = true} : vector<16x1xf32> -> vector<16x1xf32>
    %129 = vector.broadcast %128 : vector<16x1xf32> to vector<16x16xf32>
    %130 = arith.mulf %125, %129 : vector<16x16xf32>
    %131 = vector.extract_strided_slice %44 {offsets = [0, 24], sizes = [16, 8], strides = [1, 1]} : vector<16x32xf32> to vector<16x8xf32>
    %cst_47 = arith.constant dense<0.000000e+00> : vector<16x8xf32>
    %132 = tpu.matmul %130, %131, %cst_47 {dimension_numbers = #tpu.dot_dimension_numbers<[1], [0], [0], [1], [0, 0, 1, 1], [], []>} : vector<16x16xf32>, vector<16x8xf32>, vector<16x8xf32> -> vector<16x8xf32>
    %133 = vector.extract_strided_slice %45 {offsets = [24, 0], sizes = [8, 32], strides = [1, 1]} : vector<32x32xf32> to vector<8x32xf32>
    %cst_48 = arith.constant dense<0.000000e+00> : vector<16x32xf32>
    %134 = tpu.matmul %132, %133, %cst_48 {dimension_numbers = #tpu.dot_dimension_numbers<[1], [0], [0], [1], [0, 0, 1, 1], [], []>} : vector<16x8xf32>, vector<8x32xf32>, vector<16x32xf32> -> vector<16x32xf32>
    %135 = arith.addf %113, %134 : vector<16x32xf32>
    %136 = vector.broadcast %46 : vector<1x32xf32> to vector<16x32xf32>
    %137 = arith.addf %135, %136 : vector<16x32xf32>
    %138 = arith.addf %0, %137 : vector<16x32xf32>
    %c0_49 = arith.constant 0 : index
    %c0_50 = arith.constant 0 : index
    %139 = vector.load %arg7[%c0_49, %c0_50] : memref<32x32xf32, #tpu.memory_space<vmem>>, vector<32x32xf32>
    %cst_51 = arith.constant dense<0.000000e+00> : vector<16x32xf32>
    %140 = tpu.matmul %138, %139, %cst_51 {dimension_numbers = #tpu.dot_dimension_numbers<[1], [0], [0], [1], [0, 0, 1, 1], [], []>} : vector<16x32xf32>, vector<32x32xf32>, vector<16x32xf32> -> vector<16x32xf32>
    %c0_52 = arith.constant 0 : index
    %c0_53 = arith.constant 0 : index
    %141 = vector.load %arg8[%c0_52, %c0_53] : memref<1x32xf32, #tpu.memory_space<vmem>>, vector<1x32xf32>
    %142 = vector.broadcast %141 : vector<1x32xf32> to vector<16x32xf32>
    %143 = arith.addf %140, %142 : vector<16x32xf32>
    %c0_54 = arith.constant 0 : index
    %c0_55 = arith.constant 0 : index
    %144 = vector.load %arg9[%c0_54, %c0_55] : memref<32x64xf32, #tpu.memory_space<vmem>>, vector<32x64xf32>
    %cst_56 = arith.constant dense<0.000000e+00> : vector<16x64xf32>
    %145 = tpu.matmul %1, %144, %cst_56 {dimension_numbers = #tpu.dot_dimension_numbers<[1], [0], [0], [1], [0, 0, 1, 1], [], []>} : vector<16x32xf32>, vector<32x64xf32>, vector<16x64xf32> -> vector<16x64xf32>
    %c0_57 = arith.constant 0 : index
    %c0_58 = arith.constant 0 : index
    %146 = vector.load %arg10[%c0_57, %c0_58] : memref<1x64xf32, #tpu.memory_space<vmem>>, vector<1x64xf32>
    %147 = vector.broadcast %146 : vector<1x64xf32> to vector<16x64xf32>
    %148 = arith.addf %145, %147 : vector<16x64xf32>
    %149 = tpu.iota {dimensions = array<i32: 0>} : vector<16x16xi32>
    %c2_i32_59 = arith.constant 2 : i32
    %c0_i32_60 = arith.constant 0 : i32
    %150 = arith.cmpi eq, %c2_i32_59, %c0_i32_60 : i32
    %c1_i32_61 = arith.constant 1 : i32
    %151 = arith.select %150, %c1_i32_61, %c2_i32_59 : i32
    %152 = vector.broadcast %151 : i32 to vector<16x16xi32>
    %153 = arith.remsi %149, %152 : vector<16x16xi32>
    %c0_i32_62 = arith.constant 0 : i32
    %154 = vector.broadcast %c0_i32_62 : i32 to vector<16x16xi32>
    %155 = arith.cmpi ne, %153, %154 : vector<16x16xi32>
    %c0_i32_63 = arith.constant 0 : i32
    %156 = vector.broadcast %c0_i32_63 : i32 to vector<16x16xi32>
    %157 = arith.cmpi slt, %153, %156 : vector<16x16xi32>
    %c0_i32_64 = arith.constant 0 : i32
    %158 = arith.cmpi slt, %151, %c0_i32_64 : i32
    %159 = vector.broadcast %158 : i1 to vector<16x16xi1>
    %160 = vector.broadcast %159 : vector<16x16xi1> to vector<16x16xi1>
    %161 = arith.xori %157, %160 : vector<16x16xi1>
    %162 = arith.andi %161, %155 : vector<16x16xi1>
    %163 = vector.broadcast %151 : i32 to vector<16x16xi32>
    %164 = arith.addi %153, %163 : vector<16x16xi32>
    %165 = arith.select %162, %164, %153 : vector<16x16xi1>, vector<16x16xi32>
    %166 = tpu.iota {dimensions = array<i32: 1>} : vector<16x16xi32>
    %c2_i32_65 = arith.constant 2 : i32
    %c0_i32_66 = arith.constant 0 : i32
    %167 = arith.cmpi eq, %c2_i32_65, %c0_i32_66 : i32
    %c1_i32_67 = arith.constant 1 : i32
    %168 = arith.select %167, %c1_i32_67, %c2_i32_65 : i32
    %169 = vector.broadcast %168 : i32 to vector<16x16xi32>
    %170 = arith.remsi %166, %169 : vector<16x16xi32>
    %c0_i32_68 = arith.constant 0 : i32
    %171 = vector.broadcast %c0_i32_68 : i32 to vector<16x16xi32>
    %172 = arith.cmpi ne, %170, %171 : vector<16x16xi32>
    %c0_i32_69 = arith.constant 0 : i32
    %173 = vector.broadcast %c0_i32_69 : i32 to vector<16x16xi32>
    %174 = arith.cmpi slt, %170, %173 : vector<16x16xi32>
    %c0_i32_70 = arith.constant 0 : i32
    %175 = arith.cmpi slt, %168, %c0_i32_70 : i32
    %176 = vector.broadcast %175 : i1 to vector<16x16xi1>
    %177 = vector.broadcast %176 : vector<16x16xi1> to vector<16x16xi1>
    %178 = arith.xori %174, %177 : vector<16x16xi1>
    %179 = arith.andi %178, %172 : vector<16x16xi1>
    %180 = vector.broadcast %168 : i32 to vector<16x16xi32>
    %181 = arith.addi %170, %180 : vector<16x16xi32>
    %182 = arith.select %179, %181, %170 : vector<16x16xi1>, vector<16x16xi32>
    %183 = arith.cmpi eq, %165, %182 : vector<16x16xi32>
    %184 = vector.extract_strided_slice %148 {offsets = [0, 0], sizes = [16, 32], strides = [1, 1]} : vector<16x64xf32> to vector<16x32xf32>
    %185 = vector.extract_strided_slice %148 {offsets = [0, 32], sizes = [16, 32], strides = [1, 1]} : vector<16x64xf32> to vector<16x32xf32>
    %c0_71 = arith.constant 0 : index
    %c0_72 = arith.constant 0 : index
    %186 = vector.load %arg11[%c0_71, %c0_72] : memref<32x32xf32, #tpu.memory_space<vmem>>, vector<32x32xf32>
    %c0_73 = arith.constant 0 : index
    %c0_74 = arith.constant 0 : index
    %187 = vector.load %arg12[%c0_73, %c0_74] : memref<1x32xf32, #tpu.memory_space<vmem>>, vector<1x32xf32>
    %cst_75 = arith.constant 0.000000e+00 : f32
    %188 = vector.broadcast %cst_75 : f32 to vector<16x32xf32>
    %189 = vector.extract_strided_slice %143 {offsets = [0, 0], sizes = [16, 8], strides = [1, 1]} : vector<16x32xf32> to vector<16x8xf32>
    %cst_76 = arith.constant 0.353553385 : f32
    %190 = vector.broadcast %cst_76 : f32 to vector<16x8xf32>
    %191 = arith.mulf %189, %190 : vector<16x8xf32>
    %192 = vector.extract_strided_slice %184 {offsets = [0, 0], sizes = [16, 8], strides = [1, 1]} : vector<16x32xf32> to vector<16x8xf32>
    %cst_77 = arith.constant dense<0.000000e+00> : vector<16x16xf32>
    %193 = tpu.matmul %191, %192, %cst_77 {dimension_numbers = #tpu.dot_dimension_numbers<[1], [1], [0], [0], [0, 0, 1, 0], [], []>} : vector<16x8xf32>, vector<16x8xf32>, vector<16x16xf32> -> vector<16x16xf32>
    %cst_78 = arith.constant -1.000000e+30 : f32
    %194 = vector.broadcast %cst_78 : f32 to vector<16x16xf32>
    %195 = arith.select %183, %193, %194 : vector<16x16xi1>, vector<16x16xf32>
    %cst_79 = arith.constant dense<0xFF800000> : vector<16xf32>
    %196 = vector.multi_reduction <maximumf>, %195, %cst_79 [1] : vector<16x16xf32> to vector<16xf32>
    %197 = vector.shape_cast %196 : vector<16xf32> to vector<16x1xf32>
    %198 = vector.broadcast %197 : vector<16x1xf32> to vector<16x16xf32>
    %199 = arith.subf %195, %198 : vector<16x16xf32>
    %200 = math.exp %199 : vector<16x16xf32>
    %cst_80 = arith.constant dense<0.000000e+00> : vector<16xf32>
    %201 = vector.multi_reduction <add>, %200, %cst_80 [1] : vector<16x16xf32> to vector<16xf32>
    %202 = vector.shape_cast %201 : vector<16xf32> to vector<16x1xf32>
    %203 = tpu.reciprocal %202 {approx = true} : vector<16x1xf32> -> vector<16x1xf32>
    %204 = vector.broadcast %203 : vector<16x1xf32> to vector<16x16xf32>
    %205 = arith.mulf %200, %204 : vector<16x16xf32>
    %206 = vector.extract_strided_slice %185 {offsets = [0, 0], sizes = [16, 8], strides = [1, 1]} : vector<16x32xf32> to vector<16x8xf32>
    %cst_81 = arith.constant dense<0.000000e+00> : vector<16x8xf32>
    %207 = tpu.matmul %205, %206, %cst_81 {dimension_numbers = #tpu.dot_dimension_numbers<[1], [0], [0], [1], [0, 0, 1, 1], [], []>} : vector<16x16xf32>, vector<16x8xf32>, vector<16x8xf32> -> vector<16x8xf32>
    %208 = vector.extract_strided_slice %186 {offsets = [0, 0], sizes = [8, 32], strides = [1, 1]} : vector<32x32xf32> to vector<8x32xf32>
    %cst_82 = arith.constant dense<0.000000e+00> : vector<16x32xf32>
    %209 = tpu.matmul %207, %208, %cst_82 {dimension_numbers = #tpu.dot_dimension_numbers<[1], [0], [0], [1], [0, 0, 1, 1], [], []>} : vector<16x8xf32>, vector<8x32xf32>, vector<16x32xf32> -> vector<16x32xf32>
    %210 = arith.addf %188, %209 : vector<16x32xf32>
    %211 = vector.extract_strided_slice %143 {offsets = [0, 8], sizes = [16, 8], strides = [1, 1]} : vector<16x32xf32> to vector<16x8xf32>
    %cst_83 = arith.constant 0.353553385 : f32
    %212 = vector.broadcast %cst_83 : f32 to vector<16x8xf32>
    %213 = arith.mulf %211, %212 : vector<16x8xf32>
    %214 = vector.extract_strided_slice %184 {offsets = [0, 8], sizes = [16, 8], strides = [1, 1]} : vector<16x32xf32> to vector<16x8xf32>
    %cst_84 = arith.constant dense<0.000000e+00> : vector<16x16xf32>
    %215 = tpu.matmul %213, %214, %cst_84 {dimension_numbers = #tpu.dot_dimension_numbers<[1], [1], [0], [0], [0, 0, 1, 0], [], []>} : vector<16x8xf32>, vector<16x8xf32>, vector<16x16xf32> -> vector<16x16xf32>
    %cst_85 = arith.constant -1.000000e+30 : f32
    %216 = vector.broadcast %cst_85 : f32 to vector<16x16xf32>
    %217 = arith.select %183, %215, %216 : vector<16x16xi1>, vector<16x16xf32>
    %cst_86 = arith.constant dense<0xFF800000> : vector<16xf32>
    %218 = vector.multi_reduction <maximumf>, %217, %cst_86 [1] : vector<16x16xf32> to vector<16xf32>
    %219 = vector.shape_cast %218 : vector<16xf32> to vector<16x1xf32>
    %220 = vector.broadcast %219 : vector<16x1xf32> to vector<16x16xf32>
    %221 = arith.subf %217, %220 : vector<16x16xf32>
    %222 = math.exp %221 : vector<16x16xf32>
    %cst_87 = arith.constant dense<0.000000e+00> : vector<16xf32>
    %223 = vector.multi_reduction <add>, %222, %cst_87 [1] : vector<16x16xf32> to vector<16xf32>
    %224 = vector.shape_cast %223 : vector<16xf32> to vector<16x1xf32>
    %225 = tpu.reciprocal %224 {approx = true} : vector<16x1xf32> -> vector<16x1xf32>
    %226 = vector.broadcast %225 : vector<16x1xf32> to vector<16x16xf32>
    %227 = arith.mulf %222, %226 : vector<16x16xf32>
    %228 = vector.extract_strided_slice %185 {offsets = [0, 8], sizes = [16, 8], strides = [1, 1]} : vector<16x32xf32> to vector<16x8xf32>
    %cst_88 = arith.constant dense<0.000000e+00> : vector<16x8xf32>
    %229 = tpu.matmul %227, %228, %cst_88 {dimension_numbers = #tpu.dot_dimension_numbers<[1], [0], [0], [1], [0, 0, 1, 1], [], []>} : vector<16x16xf32>, vector<16x8xf32>, vector<16x8xf32> -> vector<16x8xf32>
    %230 = vector.extract_strided_slice %186 {offsets = [8, 0], sizes = [8, 32], strides = [1, 1]} : vector<32x32xf32> to vector<8x32xf32>
    %cst_89 = arith.constant dense<0.000000e+00> : vector<16x32xf32>
    %231 = tpu.matmul %229, %230, %cst_89 {dimension_numbers = #tpu.dot_dimension_numbers<[1], [0], [0], [1], [0, 0, 1, 1], [], []>} : vector<16x8xf32>, vector<8x32xf32>, vector<16x32xf32> -> vector<16x32xf32>
    %232 = arith.addf %210, %231 : vector<16x32xf32>
    %233 = vector.extract_strided_slice %143 {offsets = [0, 16], sizes = [16, 8], strides = [1, 1]} : vector<16x32xf32> to vector<16x8xf32>
    %cst_90 = arith.constant 0.353553385 : f32
    %234 = vector.broadcast %cst_90 : f32 to vector<16x8xf32>
    %235 = arith.mulf %233, %234 : vector<16x8xf32>
    %236 = vector.extract_strided_slice %184 {offsets = [0, 16], sizes = [16, 8], strides = [1, 1]} : vector<16x32xf32> to vector<16x8xf32>
    %cst_91 = arith.constant dense<0.000000e+00> : vector<16x16xf32>
    %237 = tpu.matmul %235, %236, %cst_91 {dimension_numbers = #tpu.dot_dimension_numbers<[1], [1], [0], [0], [0, 0, 1, 0], [], []>} : vector<16x8xf32>, vector<16x8xf32>, vector<16x16xf32> -> vector<16x16xf32>
    %cst_92 = arith.constant -1.000000e+30 : f32
    %238 = vector.broadcast %cst_92 : f32 to vector<16x16xf32>
    %239 = arith.select %183, %237, %238 : vector<16x16xi1>, vector<16x16xf32>
    %cst_93 = arith.constant dense<0xFF800000> : vector<16xf32>
    %240 = vector.multi_reduction <maximumf>, %239, %cst_93 [1] : vector<16x16xf32> to vector<16xf32>
    %241 = vector.shape_cast %240 : vector<16xf32> to vector<16x1xf32>
    %242 = vector.broadcast %241 : vector<16x1xf32> to vector<16x16xf32>
    %243 = arith.subf %239, %242 : vector<16x16xf32>
    %244 = math.exp %243 : vector<16x16xf32>
    %cst_94 = arith.constant dense<0.000000e+00> : vector<16xf32>
    %245 = vector.multi_reduction <add>, %244, %cst_94 [1] : vector<16x16xf32> to vector<16xf32>
    %246 = vector.shape_cast %245 : vector<16xf32> to vector<16x1xf32>
    %247 = tpu.reciprocal %246 {approx = true} : vector<16x1xf32> -> vector<16x1xf32>
    %248 = vector.broadcast %247 : vector<16x1xf32> to vector<16x16xf32>
    %249 = arith.mulf %244, %248 : vector<16x16xf32>
    %250 = vector.extract_strided_slice %185 {offsets = [0, 16], sizes = [16, 8], strides = [1, 1]} : vector<16x32xf32> to vector<16x8xf32>
    %cst_95 = arith.constant dense<0.000000e+00> : vector<16x8xf32>
    %251 = tpu.matmul %249, %250, %cst_95 {dimension_numbers = #tpu.dot_dimension_numbers<[1], [0], [0], [1], [0, 0, 1, 1], [], []>} : vector<16x16xf32>, vector<16x8xf32>, vector<16x8xf32> -> vector<16x8xf32>
    %252 = vector.extract_strided_slice %186 {offsets = [16, 0], sizes = [8, 32], strides = [1, 1]} : vector<32x32xf32> to vector<8x32xf32>
    %cst_96 = arith.constant dense<0.000000e+00> : vector<16x32xf32>
    %253 = tpu.matmul %251, %252, %cst_96 {dimension_numbers = #tpu.dot_dimension_numbers<[1], [0], [0], [1], [0, 0, 1, 1], [], []>} : vector<16x8xf32>, vector<8x32xf32>, vector<16x32xf32> -> vector<16x32xf32>
    %254 = arith.addf %232, %253 : vector<16x32xf32>
    %255 = vector.extract_strided_slice %143 {offsets = [0, 24], sizes = [16, 8], strides = [1, 1]} : vector<16x32xf32> to vector<16x8xf32>
    %cst_97 = arith.constant 0.353553385 : f32
    %256 = vector.broadcast %cst_97 : f32 to vector<16x8xf32>
    %257 = arith.mulf %255, %256 : vector<16x8xf32>
    %258 = vector.extract_strided_slice %184 {offsets = [0, 24], sizes = [16, 8], strides = [1, 1]} : vector<16x32xf32> to vector<16x8xf32>
    %cst_98 = arith.constant dense<0.000000e+00> : vector<16x16xf32>
    %259 = tpu.matmul %257, %258, %cst_98 {dimension_numbers = #tpu.dot_dimension_numbers<[1], [1], [0], [0], [0, 0, 1, 0], [], []>} : vector<16x8xf32>, vector<16x8xf32>, vector<16x16xf32> -> vector<16x16xf32>
    %cst_99 = arith.constant -1.000000e+30 : f32
    %260 = vector.broadcast %cst_99 : f32 to vector<16x16xf32>
    %261 = arith.select %183, %259, %260 : vector<16x16xi1>, vector<16x16xf32>
    %cst_100 = arith.constant dense<0xFF800000> : vector<16xf32>
    %262 = vector.multi_reduction <maximumf>, %261, %cst_100 [1] : vector<16x16xf32> to vector<16xf32>
    %263 = vector.shape_cast %262 : vector<16xf32> to vector<16x1xf32>
    %264 = vector.broadcast %263 : vector<16x1xf32> to vector<16x16xf32>
    %265 = arith.subf %261, %264 : vector<16x16xf32>
    %266 = math.exp %265 : vector<16x16xf32>
    %cst_101 = arith.constant dense<0.000000e+00> : vector<16xf32>
    %267 = vector.multi_reduction <add>, %266, %cst_101 [1] : vector<16x16xf32> to vector<16xf32>
    %268 = vector.shape_cast %267 : vector<16xf32> to vector<16x1xf32>
    %269 = tpu.reciprocal %268 {approx = true} : vector<16x1xf32> -> vector<16x1xf32>
    %270 = vector.broadcast %269 : vector<16x1xf32> to vector<16x16xf32>
    %271 = arith.mulf %266, %270 : vector<16x16xf32>
    %272 = vector.extract_strided_slice %185 {offsets = [0, 24], sizes = [16, 8], strides = [1, 1]} : vector<16x32xf32> to vector<16x8xf32>
    %cst_102 = arith.constant dense<0.000000e+00> : vector<16x8xf32>
    %273 = tpu.matmul %271, %272, %cst_102 {dimension_numbers = #tpu.dot_dimension_numbers<[1], [0], [0], [1], [0, 0, 1, 1], [], []>} : vector<16x16xf32>, vector<16x8xf32>, vector<16x8xf32> -> vector<16x8xf32>
    %274 = vector.extract_strided_slice %186 {offsets = [24, 0], sizes = [8, 32], strides = [1, 1]} : vector<32x32xf32> to vector<8x32xf32>
    %cst_103 = arith.constant dense<0.000000e+00> : vector<16x32xf32>
    %275 = tpu.matmul %273, %274, %cst_103 {dimension_numbers = #tpu.dot_dimension_numbers<[1], [0], [0], [1], [0, 0, 1, 1], [], []>} : vector<16x8xf32>, vector<8x32xf32>, vector<16x32xf32> -> vector<16x32xf32>
    %276 = arith.addf %254, %275 : vector<16x32xf32>
    %277 = vector.broadcast %187 : vector<1x32xf32> to vector<16x32xf32>
    %278 = arith.addf %276, %277 : vector<16x32xf32>
    %279 = arith.addf %138, %278 : vector<16x32xf32>
    %c0_104 = arith.constant 0 : index
    %c0_105 = arith.constant 0 : index
    %280 = vector.load %arg13[%c0_104, %c0_105] : memref<32x16xf32, #tpu.memory_space<vmem>>, vector<32x16xf32>
    %cst_106 = arith.constant dense<0.000000e+00> : vector<16x16xf32>
    %281 = tpu.matmul %279, %280, %cst_106 {dimension_numbers = #tpu.dot_dimension_numbers<[1], [0], [0], [1], [0, 0, 1, 1], [], []>} : vector<16x32xf32>, vector<32x16xf32>, vector<16x16xf32> -> vector<16x16xf32>
    %c0_107 = arith.constant 0 : index
    %c0_108 = arith.constant 0 : index
    %282 = vector.load %arg14[%c0_107, %c0_108] : memref<1x16xf32, #tpu.memory_space<vmem>>, vector<1x16xf32>
    %283 = vector.broadcast %282 : vector<1x16xf32> to vector<16x16xf32>
    %284 = arith.addf %281, %283 : vector<16x16xf32>
    %cst_109 = arith.constant 0.000000e+00 : f32
    %285 = vector.broadcast %cst_109 : f32 to vector<16x16xf32>
    %286 = arith.maximumf %284, %285 : vector<16x16xf32>
    %c0_110 = arith.constant 0 : index
    %c0_111 = arith.constant 0 : index
    %287 = vector.load %arg15[%c0_110, %c0_111] : memref<16x32xf32, #tpu.memory_space<vmem>>, vector<16x32xf32>
    %cst_112 = arith.constant dense<0.000000e+00> : vector<16x32xf32>
    %288 = tpu.matmul %286, %287, %cst_112 {dimension_numbers = #tpu.dot_dimension_numbers<[1], [0], [0], [1], [0, 0, 1, 1], [], []>} : vector<16x16xf32>, vector<16x32xf32>, vector<16x32xf32> -> vector<16x32xf32>
    %c0_113 = arith.constant 0 : index
    %c0_114 = arith.constant 0 : index
    %289 = vector.load %arg16[%c0_113, %c0_114] : memref<1x32xf32, #tpu.memory_space<vmem>>, vector<1x32xf32>
    %290 = vector.broadcast %289 : vector<1x32xf32> to vector<16x32xf32>
    %291 = arith.addf %288, %290 : vector<16x32xf32>
    %292 = arith.addf %279, %291 : vector<16x32xf32>
    %c0_115 = arith.constant 0 : index
    %c0_116 = arith.constant 0 : index
    %293 = vector.load %arg17[%c0_115, %c0_116] : memref<16x32xf32, #tpu.memory_space<vmem>>, vector<16x32xf32>
    tpu.vector_store %arg17[%c0_115, %c0_116], %292 {strides = array<i32>} : memref<16x32xf32, #tpu.memory_space<vmem>>, vector<16x32xf32>,
    return
  }
  func.func @transform_0(%arg0: i32) -> (i32, i32) {
    %c0_i32 = arith.constant 0 : i32
    %c0_i32_0 = arith.constant 0 : i32
    %c0_i32_1 = arith.constant 0 : i32
    return %c0_i32, %c0_i32_0 : i32, i32
  }
  func.func @transform_1(%arg0: i32) -> (i32, i32) {
    %c0_i32 = arith.constant 0 : i32
    %c0_i32_0 = arith.constant 0 : i32
    %c0_i32_1 = arith.constant 0 : i32
    return %c0_i32, %c0_i32_0 : i32, i32
  }
  func.func @transform_2(%arg0: i32) -> (i32, i32) {
    %c0_i32 = arith.constant 0 : i32
    %c0_i32_0 = arith.constant 0 : i32
    %c0_i32_1 = arith.constant 0 : i32
    return %c0_i32, %c0_i32_0 : i32, i32
  }
  func.func @transform_3(%arg0: i32) -> (i32, i32) {
    %c0_i32 = arith.constant 0 : i32
    %c0_i32_0 = arith.constant 0 : i32
    %c0_i32_1 = arith.constant 0 : i32
    return %c0_i32, %c0_i32_0 : i32, i32
  }
  func.func @transform_4(%arg0: i32) -> (i32, i32) {
    %c0_i32 = arith.constant 0 : i32
    %c0_i32_0 = arith.constant 0 : i32
    %c0_i32_1 = arith.constant 0 : i32
    return %c0_i32, %c0_i32_0 : i32, i32
  }
  func.func @transform_5(%arg0: i32) -> (i32, i32) {
    %c0_i32 = arith.constant 0 : i32
    %c0_i32_0 = arith.constant 0 : i32
    %c0_i32_1 = arith.constant 0 : i32
    return %c0_i32, %c0_i32_0 : i32, i32
  }
  func.func @transform_6(%arg0: i32) -> (i32, i32) {
    %c0_i32 = arith.constant 0 : i32
    %c0_i32_0 = arith.constant 0 : i32
    %c0_i32_1 = arith.constant 0 : i32
    return %c0_i32, %c0_i32_0 : i32, i32
  }
  func.func @transform_7(%arg0: i32) -> (i32, i32) {
    %c0_i32 = arith.constant 0 : i32
    %c0_i32_0 = arith.constant 0 : i32
    %c0_i32_1 = arith.constant 0 : i32
    return %c0_i32, %c0_i32_0 : i32, i32
  }
  func.func @transform_8(%arg0: i32) -> (i32, i32) {
    %c0_i32 = arith.constant 0 : i32
    %c0_i32_0 = arith.constant 0 : i32
    %c0_i32_1 = arith.constant 0 : i32
    return %c0_i32, %c0_i32_0 : i32, i32
  }
  func.func @transform_9(%arg0: i32) -> (i32, i32) {
    %c0_i32 = arith.constant 0 : i32
    %c0_i32_0 = arith.constant 0 : i32
    %c0_i32_1 = arith.constant 0 : i32
    return %c0_i32, %c0_i32_0 : i32, i32
  }
  func.func @transform_10(%arg0: i32) -> (i32, i32) {
    %c0_i32 = arith.constant 0 : i32
    %c0_i32_0 = arith.constant 0 : i32
    %c0_i32_1 = arith.constant 0 : i32
    return %c0_i32, %c0_i32_0 : i32, i32
  }
  func.func @transform_11(%arg0: i32) -> (i32, i32) {
    %c0_i32 = arith.constant 0 : i32
    %c0_i32_0 = arith.constant 0 : i32
    %c0_i32_1 = arith.constant 0 : i32
    return %c0_i32, %c0_i32_0 : i32, i32
  }
  func.func @transform_12(%arg0: i32) -> (i32, i32) {
    %c0_i32 = arith.constant 0 : i32
    %c0_i32_0 = arith.constant 0 : i32
    %c0_i32_1 = arith.constant 0 : i32
    return %c0_i32, %c0_i32_0 : i32, i32
  }
  func.func @transform_13(%arg0: i32) -> (i32, i32) {
    %c0_i32 = arith.constant 0 : i32
    %c0_i32_0 = arith.constant 0 : i32
    %c0_i32_1 = arith.constant 0 : i32
    return %c0_i32, %c0_i32_0 : i32, i32
  }
  func.func @transform_14(%arg0: i32) -> (i32, i32) {
    %c0_i32 = arith.constant 0 : i32
    %c0_i32_0 = arith.constant 0 : i32
    %c0_i32_1 = arith.constant 0 : i32
    return %c0_i32, %c0_i32_0 : i32, i32
  }
  func.func @transform_15(%arg0: i32) -> (i32, i32) {
    %c0_i32 = arith.constant 0 : i32
    %c0_i32_0 = arith.constant 0 : i32
    %c0_i32_1 = arith.constant 0 : i32
    return %c0_i32, %c0_i32_0 : i32, i32
  }
  func.func @transform_16(%arg0: i32) -> (i32, i32) {
    %c0_i32 = arith.constant 0 : i32
    %c0_i32_0 = arith.constant 0 : i32
    %c0_i32_1 = arith.constant 0 : i32
    return %c0_i32, %c0_i32_0 : i32, i32
  }
}

</mosaic_0001>

<bundles_post_ra>
// kernel: tpu_custom_call.1
= control target key start
LH: loop header
LB: loop body
LE: loop exit
PB: predicated region body
PF: predicated region fallthrough
CT: control target
= control target key end

     0   :  { %s4550_s0 = inlined_call_operand.hbm [shape: f32[16,32], index: 0, kind: input, shape index: {}]   ;;  %s4551_s1 = inlined_call_operand.hbm [shape: f32[16,32], index: 1, kind: input, shape index: {}]   ;;  %s4552_s2 = inlined_call_operand.vmem [shape: f32[32,96], index: 2, kind: input, shape index: {}]   ;;  %s4553_s3 = inlined_call_operand.vmem [shape: f32[1,96], index: 3, kind: input, shape index: {}]   ;;  %s4554_s4 = inlined_call_operand.hbm [shape: f32[32,32], index: 4, kind: input, shape index: {}]   ;;  %s4555_s5 = inlined_call_operand.hbm [shape: f32[1,32], index: 5, kind: input, shape index: {}]   ;;  %s4556_s6 = inlined_call_operand.vmem [shape: f32[32,32], index: 6, kind: input, shape index: {}]   ;;  %s4557_s7 = inlined_call_operand.hbm [shape: f32[1,32], index: 7, kind: input, shape index: {}]   ;;  %s4558_s8 = inlined_call_operand.hbm [shape: f32[32,64], index: 8, kind: input, shape index: {}]   ;;  %s4559_s9 = inlined_call_operand.hbm [shape: f32[1,64], index: 9, kind: input, shape index: {}]   ;;  %s4560_s10 = inlined_call_operand.hbm [shape: f32[32,32], index: 10, kind: input, shape index: {}]   ;;  %s4561_s11 = inlined_call_operand.hbm [shape: f32[1,32], index: 11, kind: input, shape index: {}]   ;;  %s4562_s12 = inlined_call_operand.vmem [shape: f32[32,16], index: 12, kind: input, shape index: {}]   ;;  %s4563_s13 = inlined_call_operand.hbm [shape: f32[1,16], index: 13, kind: input, shape index: {}]   ;;  %s4564_s14 = inlined_call_operand.vmem [shape: f32[16,32], index: 14, kind: input, shape index: {}]   ;;  %s4565_s15 = inlined_call_operand.vmem [shape: f32[1,32], index: 15, kind: input, shape index: {}]   ;;  %s4566_s16 = inlined_call_operand.hbm [shape: f32[16,32], index: 16, kind: output, shape index: {}]  }
   0x1   :  { %4568 = sst [smem:[#allocation27_spill]] %s4550_s0 }
   0x2   :  { %21 = vsyncpa [#allocation3], 0 }
   0x3   :  { %22 = vsyncpa [#allocation6], 0 }
   0x4   :  { %23 = vsyncpa [#allocation9], 0 }
   0x5   :  { %24 = vsyncpa [#allocation12], 0 }
   0x6   :  { %25 = vsyncpa [#allocation15], 0 }
   0x7   :  { %26 = vsyncpa [#allocation18], 0 }
   0x8   :  { %27 = vsyncpa [#allocation4], 0  ;;  %s3965_s21 = smov [#allocation5]   ;;  %s3966_s23 = smov [#allocation8]  }
   0x9   :  { %s45_s22 = sshll.u32 %s3965_s21, 4  ;;  %s74_s24 = sshll.u32 %s3966_s23, 4  ;;  %s46_s22 = int_to_ptr.vmem [resolvable:$true] %s45_s22  ;;  %s4074_s24 = int_to_ptr.vmem [resolvable:$true] %s74_s24 }
   0xa   :  { %s3709_s27 = scalar_lea.hbm %s4551_s1, 256 }
   0xb   :  { %p3710_p0 = scmp.ne.s32.totalorder %s4551_s1, %s3709_s27  ;;  %p3713_p1 = scmp.lt.u32.totalorder %s3709_s27, %s4551_s1 }
   0xd   :  { %p3715_p2 = pnand %p3713_p1, %p3710_p0 }
   0xf   :  { %3718 = shalt.err (!%p3715_p2)
}
  0x10   :  { %s3719_s17 = scalar_lea.vmem %s46_s22, 256  ;;  %p3724_p4 = scmp.lt.s32.totalorder %s46_s22, %s46_s22 }
  0x11   :  { %p3720_p3 = scmp.ne.s32.totalorder %s46_s22, %s3719_s17  ;;  %p3725_p5 = scmp.lt.s32.totalorder %s3719_s17, %s3719_s17 }
  0x13   :  { %p3726_p6 = por %p3725_p5, %p3724_p4 }
  0x15   :  { %p3727_p7 = pnand %p3726_p6, %p3720_p3 }
  0x17   :  { %3730 = shalt.err (!%p3727_p7)
}
  0x18   :  { %s3967_s18 = smov 128   ;;  %s3968_s19 = smov 8  }
  0x19   :  { %51 = dma.hbm_to_vmem [thread:$0]  %s4551_s1, 256, %s46_s22, [#allocation6], %s3967_s18, %s3967_s18, %s3968_s19  }
  0x1a   :  { %s3731_s26 = scalar_lea.hbm %s4555_s5, 16 }
  0x1b   :  { %p3732_p8 = scmp.ne.s32.totalorder %s4555_s5, %s3731_s26  ;;  %p3735_p9 = scmp.lt.u32.totalorder %s3731_s26, %s4555_s5 }
  0x1d   :  { %p3737_p10 = pnand %p3735_p9, %p3732_p8 }
  0x1f   :  { %3740 = shalt.err (!%p3737_p10)
}
  0x20   :  { %s3741_s0 = scalar_lea.vmem %s4074_s24, 16  ;;  %s3745_s1 = scalar_lea.vmem %s4074_s24, 32 }
  0x21   :  { %p3742_p11 = scmp.ne.s32.totalorder %s4074_s24, %s3741_s0  ;;  %p3746_p12 = scmp.lt.s32.totalorder %s4074_s24, %s4074_s24 }
  0x22   :  { %p3747_p13 = scmp.lt.s32.totalorder %s3745_s1, %s3741_s0 }
  0x24   :  { %p3748_p0 = por %p3747_p13, %p3746_p12 }
  0x26   :  { %p3749_p1 = pnand %p3748_p0, %p3742_p11 }
  0x28   :  { %3752 = shalt.err (!%p3749_p1)
}
  0x29   :  { %77 = dma.hbm_to_vmem [thread:$0]  %s4555_s5, 16, %s4074_s24, [#allocation9]  }
  0x2a   :  { %s3969_s20 = smov [#allocation11]   ;;  %s3970_s23 = smov [#allocation14]  }
  0x2b   :  { %s95_s21 = sshll.u32 %s3969_s20, 4  ;;  %s117_s25 = sshll.u32 %s3970_s23, 4  ;;  %s96_s21 = int_to_ptr.vmem [resolvable:$true] %s95_s21  ;;  %s4109_s25 = int_to_ptr.vmem [resolvable:$true] %s117_s25 }
  0x2c   :  { %s3753_s28 = scalar_lea.hbm %s4558_s8, 512 }
  0x2d   :  { %p3754_p2 = scmp.ne.s32.totalorder %s4558_s8, %s3753_s28  ;;  %p3757_p3 = scmp.lt.u32.totalorder %s3753_s28, %s4558_s8 }
  0x2f   :  { %p3759_p4 = pnand %p3757_p3, %p3754_p2 }
  0x31   :  { %3762 = shalt.err (!%p3759_p4)
}
  0x32   :  { %s3763_s5 = scalar_lea.vmem %s96_s21, 512  ;;  %p3768_p6 = scmp.lt.s32.totalorder %s96_s21, %s96_s21 }
  0x33   :  { %p3764_p5 = scmp.ne.s32.totalorder %s96_s21, %s3763_s5  ;;  %p3769_p7 = scmp.lt.s32.totalorder %s3763_s5, %s3763_s5 }
  0x35   :  { %p3770_p8 = por %p3769_p7, %p3768_p6 }
  0x37   :  { %p3771_p9 = pnand %p3770_p8, %p3764_p5 }
  0x39   :  { %3774 = shalt.err (!%p3771_p9)
}
  0x3a   :  { %101 = dma.hbm_to_vmem [thread:$0]  %s4558_s8, 512, %s96_s21, [#allocation12], %s3967_s18, %s3967_s18, %s3968_s19  }
  0x3b   :  { %s3775_s23 = scalar_lea.hbm %s4560_s10, 512 }
  0x3c   :  { %p3776_p10 = scmp.ne.s32.totalorder %s4560_s10, %s3775_s23  ;;  %p3779_p11 = scmp.lt.u32.totalorder %s3775_s23, %s4560_s10 }
  0x3e   :  { %p3781_p12 = pnand %p3779_p11, %p3776_p10 }
  0x40   :  { %3784 = shalt.err (!%p3781_p12)
}
  0x41   :  { %s3785_s30 = scalar_lea.vmem %s4109_s25, 512  ;;  %p3790_p0 = scmp.lt.s32.totalorder %s4109_s25, %s4109_s25 }
  0x42   :  { %p3786_p13 = scmp.ne.s32.totalorder %s4109_s25, %s3785_s30  ;;  %p3791_p1 = scmp.lt.s32.totalorder %s3785_s30, %s3785_s30 }
  0x44   :  { %p3792_p2 = por %p3791_p1, %p3790_p0 }
  0x46   :  { %p3793_p3 = pnand %p3792_p2, %p3786_p13 }
  0x48   :  { %3796 = shalt.err (!%p3793_p3)
}
  0x49   :  { %123 = dma.hbm_to_vmem [thread:$0]  %s4560_s10, 512, %s4109_s25, [#allocation15], %s3967_s18, %s3967_s18, %s3968_s19  }
  0x4a   :  { %s3971_s0 = smov [#allocation2]   ;;  %s3972_s5 = smov [#allocation7]  }
  0x4b   :  { %s33_s1 = sshll.u32 %s3971_s0, 4  ;;  %s61_s24 = sshll.u32 %s3972_s5, 4  ;;  %s34_s1 = int_to_ptr.vmem [resolvable:$true] %s33_s1  ;;  %s4146_s24 = int_to_ptr.vmem [resolvable:$true] %s61_s24 }
  0x4c   :  { %s4569_s20 = sld [smem:[#allocation27_spill]] }
  0x52   :  { %s3797_s23 = scalar_lea.hbm %s4569_s20, 256 }
  0x53   :  { %p3798_p4 = scmp.ne.s32.totalorder %s4569_s20, %s3797_s23  ;;  %p3801_p5 = scmp.lt.u32.totalorder %s3797_s23, %s4569_s20 }
  0x55   :  { %p3803_p6 = pnand %p3801_p5, %p3798_p4 }
  0x57   :  { %3806 = shalt.err (!%p3803_p6)
}
  0x58   :  { %s3807_s10 = scalar_lea.vmem %s34_s1, 256  ;;  %p3812_p8 = scmp.lt.s32.totalorder %s34_s1, %s34_s1 }
  0x59   :  { %p3808_p7 = scmp.ne.s32.totalorder %s34_s1, %s3807_s10  ;;  %p3813_p9 = scmp.lt.s32.totalorder %s3807_s10, %s3807_s10 }
  0x5b   :  { %p3814_p10 = por %p3813_p9, %p3812_p8 }
  0x5d   :  { %p3815_p11 = pnand %p3814_p10, %p3808_p7 }
  0x5f   :  { %3818 = shalt.err (!%p3815_p11)
}
  0x60   :  { %39 = dma.hbm_to_vmem [thread:$0]  %s4569_s20, 256, %s34_s1, [#allocation3], %s3967_s18, %s3967_s18, %s3968_s19  }
  0x61   :  { %s3819_s0 = scalar_lea.hbm %s4554_s4, 512 }
  0x62   :  { %p3820_p12 = scmp.ne.s32.totalorder %s4554_s4, %s3819_s0  ;;  %p3823_p13 = scmp.lt.u32.totalorder %s3819_s0, %s4554_s4 }
  0x64   :  { %p3825_p0 = pnand %p3823_p13, %p3820_p12 }
  0x66   :  { %3828 = shalt.err (!%p3825_p0)
}
  0x67   :  { %s3829_s26 = scalar_lea.vmem %s4146_s24, 512  ;;  %p3834_p2 = scmp.lt.s32.totalorder %s4146_s24, %s4146_s24 }
  0x68   :  { %p3830_p1 = scmp.ne.s32.totalorder %s4146_s24, %s3829_s26  ;;  %p3835_p3 = scmp.lt.s32.totalorder %s3829_s26, %s3829_s26 }
  0x6a   :  { %p3836_p4 = por %p3835_p3, %p3834_p2 }
  0x6c   :  { %p3837_p5 = pnand %p3836_p4, %p3830_p1 }
  0x6e   :  { %3840 = shalt.err (!%p3837_p5)
}
  0x6f   :  { %67 = dma.hbm_to_vmem [thread:$0]  %s4554_s4, 512, %s4146_s24, [#allocation6], %s3967_s18, %s3967_s18, %s3968_s19  }
  0x70   :  { %s3973_s27 = smov [#allocation10]   ;;  %s3974_s29 = smov [#allocation13]  }
  0x71   :  { %s86_s28 = sshll.u32 %s3973_s27, 4  ;;  %s108_s10 = sshll.u32 %s3974_s29, 4  ;;  %s87_s28 = int_to_ptr.vmem [resolvable:$true] %s86_s28  ;;  %s109_s10 = int_to_ptr.vmem [resolvable:$true] %s108_s10 }
  0x72   :  { %s3841_s8 = scalar_lea.hbm %s4557_s7, 16 }
  0x73   :  { %p3842_p6 = scmp.ne.s32.totalorder %s4557_s7, %s3841_s8  ;;  %p3845_p7 = scmp.lt.u32.totalorder %s3841_s8, %s4557_s7 }
  0x75   :  { %p3847_p8 = pnand %p3845_p7, %p3842_p6 }
  0x77   :  { %3850 = shalt.err (!%p3847_p8)
}
  0x78   :  { %s3851_s4 = scalar_lea.vmem %s87_s28, 16  ;;  %s3855_s24 = scalar_lea.vmem %s87_s28, 32 }
  0x79   :  { %p3852_p9 = scmp.ne.s32.totalorder %s87_s28, %s3851_s4  ;;  %p3856_p10 = scmp.lt.s32.totalorder %s87_s28, %s87_s28 }
  0x7a   :  { %p3857_p11 = scmp.lt.s32.totalorder %s3855_s24, %s3851_s4 }
  0x7c   :  { %p3858_p12 = por %p3857_p11, %p3856_p10 }
  0x7e   :  { %p3859_p13 = pnand %p3858_p12, %p3852_p9 }
  0x80   :  { %3862 = shalt.err (!%p3859_p13)
}
  0x81   :  { %89 = dma.hbm_to_vmem [thread:$0]  %s4557_s7, 16, %s87_s28, [#allocation9]  }
  0x82   :  { %s3863_s20 = scalar_lea.hbm %s4559_s9, 16 }
  0x83   :  { %p3864_p0 = scmp.ne.s32.totalorder %s4559_s9, %s3863_s20  ;;  %p3867_p1 = scmp.lt.u32.totalorder %s3863_s20, %s4559_s9 }
  0x85   :  { %p3869_p2 = pnand %p3867_p1, %p3864_p0 }
  0x87   :  { %3872 = shalt.err (!%p3869_p2)
}
  0x88   :  { %s3873_s8 = scalar_lea.vmem %s109_s10, 16  ;;  %s3877_s21 = scalar_lea.vmem %s109_s10, 32 }
  0x89   :  { %p3874_p3 = scmp.ne.s32.totalorder %s109_s10, %s3873_s8  ;;  %p3878_p4 = scmp.lt.s32.totalorder %s109_s10, %s109_s10 }
  0x8a   :  { %p3879_p5 = scmp.lt.s32.totalorder %s3877_s21, %s3873_s8 }
  0x8c   :  { %p3880_p6 = por %p3879_p5, %p3878_p4 }
  0x8e   :  { %p3881_p7 = pnand %p3880_p6, %p3874_p3 }
  0x90   :  { %3884 = shalt.err (!%p3881_p7)
}
  0x91   :  { %111 = dma.hbm_to_vmem [thread:$0]  %s4559_s9, 16, %s109_s10, [#allocation12]  }
  0x92   :  { %s3975_s0 = smov [#allocation16]   ;;  %s3976_s22 = smov [#allocation17]  }
  0x93   :  { %s130_s5 = sshll.u32 %s3975_s0, 4  ;;  %s142_s4 = sshll.u32 %s3976_s22, 4  ;;  %s131_s5 = int_to_ptr.vmem [resolvable:$true] %s130_s5  ;;  %s143_s4 = int_to_ptr.vmem [resolvable:$true] %s142_s4 }
  0x94   :  { %s3885_s23 = scalar_lea.hbm %s4561_s11, 16 }
  0x95   :  { %p3886_p8 = scmp.ne.s32.totalorder %s4561_s11, %s3885_s23  ;;  %p3889_p9 = scmp.lt.u32.totalorder %s3885_s23, %s4561_s11 }
  0x97   :  { %p3891_p10 = pnand %p3889_p9, %p3886_p8 }
  0x99   :  { %3894 = shalt.err (!%p3891_p10)
}
  0x9a   :  { %s3895_s9 = scalar_lea.vmem %s131_s5, 16  ;;  %s3899_s10 = scalar_lea.vmem %s131_s5, 32 }
  0x9b   :  { %p3896_p11 = scmp.ne.s32.totalorder %s131_s5, %s3895_s9  ;;  %p3900_p12 = scmp.lt.s32.totalorder %s131_s5, %s131_s5 }
  0x9c   :  { %p3901_p13 = scmp.lt.s32.totalorder %s3899_s10, %s3895_s9 }
  0x9e   :  { %p3902_p0 = por %p3901_p13, %p3900_p12 }
  0xa0   :  { %p3903_p1 = pnand %p3902_p0, %p3896_p11 }
  0xa2   :  { %3906 = shalt.err (!%p3903_p1)
}
  0xa3   :  { %133 = dma.hbm_to_vmem [thread:$0]  %s4561_s11, 16, %s131_s5, [#allocation15]  }
  0xa4   :  { %s3907_s21 = scalar_lea.hbm %s4563_s13, 16 }
  0xa5   :  { %p3908_p2 = scmp.ne.s32.totalorder %s4563_s13, %s3907_s21  ;;  %p3911_p3 = scmp.lt.u32.totalorder %s3907_s21, %s4563_s13 }
  0xa7   :  { %p3913_p4 = pnand %p3911_p3, %p3908_p2 }
  0xa9   :  { %3916 = shalt.err (!%p3913_p4)
}
  0xaa   :  { %s3917_s24 = scalar_lea.vmem %s143_s4, 16  ;;  %s3921_s17 = scalar_lea.vmem %s143_s4, 32 }
  0xab   :  { %p3918_p5 = scmp.ne.s32.totalorder %s143_s4, %s3917_s24  ;;  %p3922_p6 = scmp.lt.s32.totalorder %s143_s4, %s143_s4 }
  0xac   :  { %p3923_p7 = scmp.lt.s32.totalorder %s3921_s17, %s3917_s24 }
  0xae   :  { %p3924_p8 = por %p3923_p7, %p3922_p6 }
  0xb0   :  { %p3925_p9 = pnand %p3924_p8, %p3918_p5 }
  0xb2   :  { %3928 = shalt.err (!%p3925_p9)
}
  0xb3   :  { %145 = dma.hbm_to_vmem [thread:$0]  %s4563_s13, 16, %s143_s4, [#allocation18]  }
  0xb4   :  { %3951 = dma.done.wait [#allocation3], 256  }
  0xb5   :  { %3952 = vsyncadd [#allocation3], 4294967040 }
  0xb6   :  { %3953 = dma.done.wait [#allocation6], 768  }
  0xb7   :  { %3954 = vsyncadd [#allocation6], 4294966528 }
  0xb8   :  { %3955 = dma.done.wait [#allocation9], 32  }
  0xb9   :  { %3956 = vsyncadd [#allocation9], 4294967264 }
  0xba   :  { %3957 = dma.done.wait [#allocation12], 528  }
  0xbb   :  { %3958 = vsyncadd [#allocation12], 4294966768 }
  0xbc   :  { %3959 = dma.done.wait [#allocation15], 528  }
  0xbd   :  { %3960 = vsyncadd [#allocation15], 4294966768 }
  0xbe   :  { %3961 = dma.done.wait [#allocation18], 16  }
  0xbf   :  { %3962 = vsyncadd [#allocation18], 4294967280  ;;  %vm195_vm0 = vcmask 261120   ;;  %v184_v0 = vld [vmem:[%s4552_s2] sm:$0xff]  ;;  %v185_v1 = vld [vmem:[%s4552_s2 + $0x8] sm:$0xff]  ;;  %vm333_vm1 = vcmask 64512   ;;  %v277_v33 = vlaneseq }
  0xc0   :  { %v186_v2 = vld [vmem:[%s4552_s2 + $0x10] sm:$0xff]  ;;  %v3418_v3 = vpack.c.bf16 %v185_v1, %v184_v0  ;;  %v187_v4 = vld [vmem:[%s4552_s2 + $0x18] sm:$0xff]  ;;  %v4243_v5 = vld [vmem:[#allocation2] sm:$0xff]  ;;  %s3977_s2 = smov 96   ;;  %s3978_s25 = smov 120   ;;  %vm421_vm5 = vcmask 130048  }
  0xc1   :  { %v3422_v6 = vpack.c.bf16 %v187_v4, %v186_v2  ;;  %3223 = vmatprep.mubr.msk.f32.mxu0 %vm195_vm0, %v4243_v5  ;;  %v4247_v7 = vld [vmem:[#allocation2 + $0x8] sm:$0xff]  ;;  %v3018_v8 = vld [vmem:[%s4553_s3] ss:$0 sm:$0xff]  ;;  %s3979_s3 = smov 88   ;;  %s3980_s30 = smov 80   ;;  %vm4278_vm2 = vmpackc.low %vm333_vm1, %vm333_vm1  ;;  %v278_v34 = vshrl.u32 %v277_v33, 7 }
  0xc2   :  { %3419 = vmatprep.subr.bf16.mxu0 %v3418_v3  ;;  %s3981_s8 = smov 112   ;;  %v305_v36 = vand.u32 127, %v277_v33  ;;  %s3982_s21 = smov 56   ;;  %v1661_v41 = vld [vmem:[#allocation14 + $0x10] sm:$0xff] }
  0xc3   :  { %3421 = vmatpush3.bf16.msra.mxu0 %v3418_v3  ;;  %v279_v35 = vadd.s32 8, %v278_v34  ;;  %v284_v39 = vand.u32 1, %v278_v34  ;;  %s3983_s7 = smov 72   ;;  %s3984_s28 = smov 64  }
  0xc4   :  { %3423 = vmatprep.subr.bf16.mxu0 %v3422_v6  ;;  %v310_v38 = vand.u32 1, %v305_v36  ;;  %s3985_s0 = smov 104   ;;  %s3986_s22 = smov 48  }
  0xc5   :  { %v291_v37 = vand.u32 1, %v279_v35  ;;  %s3987_s24 = smov 40  }
  0xc6   :  { %vm4304_vm4 = vcmp.eq.s32.totalorder %v284_v39, %v310_v38 }
  0xc7   :  { %3425 = vmatpush3.bf16.msra.mxu0 %v3422_v6  ;;  %vm4300_vm3 = vcmp.eq.s32.totalorder %v291_v37, %v310_v38 }
  0xca   :  { %3224 = vmatmul.mubr.msk.f32.vlgmr.msra.gmra.mrb[0].mxu0 %vm195_vm0, %v4247_v7 }
 0x19d   :  { %v3225_v9 = vpop.f32.mrb[0].mxu0 }
 0x19e   :  { %v274_v10 = vadd.f32 %v3225_v9, %v3018_v8  ;;  %v268_v11 = vpop.f32.mrb[1].mxu0 }
 0x19f   :  { %v269_v12 = vadd.f32 %v3018_v8, %v268_v11 }
 0x1a0   :  { %v4264_v15 = vmul.f32 0.35355338, %v274_v10 }
 0x1a1   :  { %v4254_v13 = vpack.i.bf16 %v274_v10, %v269_v12  ;;  %v4256_v14 = vmul.f32 0.35355338, %v269_v12 }
 0x1a3   :  { %3571 = vrot.lane.b32.xlu0 %v4254_v13, %s3977_s2  ;;  %531 = vrot.lane.b32.xlu1 %v4256_v14, %s3978_s25 }
 0x1a4   :  { %3230 = vmatprep.mubr.msk.f32.mxu1 %vm333_vm1, %v4256_v14 }
 0x1a7   :  { %3576 = vrot.lane.b32.xlu0 %v4254_v13, %s3979_s3  ;;  %533 = vrot.lane.b32.xlu1 %v4264_v15, %s3978_s25 }
 0x1ab   :  { %3581 = vrot.lane.b32.xlu0 %v4254_v13, %s3980_s30  ;;  %895 = vrot.lane.b32.xlu1 %v4256_v14, %s3981_s8 }
 0x1af   :  { %897 = vrot.lane.b32.xlu0 %v4264_v15, %s3981_s8 }
 0x215   :  { %v3572_v16 = vpop.permute.xlu0 %3571  ;;  %v532_v26 = vpop.permute.xlu1 %531 }
 0x216   :  { %v3574_v17 = vunpack.i.h.bf16 %v3572_v16  ;;  %v3573_v18 = vunpack.i.l.bf16 %v3572_v16 }
 0x218   :  { %v3426_v20 = vpack.c.bf16 %v3574_v17, %v3573_v18 }
 0x219   :  { %v3577_v21 = vpop.permute.xlu0 %3576  ;;  %v534_v30 = vpop.permute.xlu1 %533 }
 0x21a   :  { %v3579_v22 = vunpack.i.h.bf16 %v3577_v21  ;;  %v3578_v23 = vunpack.i.l.bf16 %v3577_v21  ;;  %3428 = vmatprep.subr.msk.bf16.mxu1 %vm4278_vm2, %v3426_v20 }
 0x21b   :  { %3431 = vmatpush3.bf16.xpose.msk.msra.mxu1 %vm4278_vm2, %v3426_v20 }
 0x21c   :  { %v3436_v24 = vpack.c.bf16 %v3579_v22, %v3578_v23 }
 0x21d   :  { %v3582_v25 = vpop.permute.xlu0 %3581  ;;  %v896_v31 = vpop.permute.xlu1 %895 }
 0x21e   :  { %v3584_v27 = vunpack.i.h.bf16 %v3582_v25  ;;  %v3583_v28 = vunpack.i.l.bf16 %v3582_v25  ;;  %3438 = vmatprep.subr.msk.bf16.mxu1 %vm4278_vm2, %v3436_v24 }
 0x220   :  { %v3446_v29 = vpack.c.bf16 %v3584_v27, %v3583_v28 }
 0x221   :  { %v898_v32 = vpop.permute.xlu0 %897 }
 0x222   :  { %3231 = vmatmul.mubr.msk.f32.vlgmr.msra.gmra.mrb[0].mxu1 %vm333_vm1, %v4264_v15 }
 0x223   :  { %3441 = vmatpush3.bf16.xpose.msk.msra.mxu1 %vm4278_vm2, %v3436_v24  ;;  %3244 = vmatprep.mubr.msk.f32.mxu1 %vm333_vm1, %v532_v26 }
 0x224   :  { %3448 = vmatprep.subr.msk.bf16.mxu1 %vm4278_vm2, %v3446_v29 }
 0x22a   :  { %3245 = vmatmul.mubr.msk.f32.vlgmr.msra.gmra.mrb[2].mxu1 %vm333_vm1, %v534_v30 }
 0x22b   :  { %3451 = vmatpush3.bf16.xpose.msk.msra.mxu1 %vm4278_vm2, %v3446_v29  ;;  %3268 = vmatprep.mubr.msk.f32.mxu1 %vm333_vm1, %v896_v31 }
 0x232   :  { %3269 = vmatmul.mubr.msk.f32.vlgmr.msra.gmra.mrb[4].mxu1 %vm333_vm1, %v898_v32 }
 0x2f5   :  { %v3232_v42 = vpop.f32.mrb[0].mxu1 }
 0x2f6   :  { %v420_v43 = vsel %vm4300_vm3, %v3232_v42, -1e+30  ;;  %v410_v44 = vpop.f32.mrb[1].mxu1 }
 0x2f7   :  { %v419_v45 = vsel %vm4304_vm4, %v410_v44, -1e+30  ;;  %v425_v46 = vsel %vm421_vm5, %v420_v43, -inf }
 0x2f8   :  { %426 = vmax.xlane.f32.xlu0 %v425_v46  ;;  %v422_v47 = vsel %vm421_vm5, %v419_v45, -inf }
 0x2f9   :  { %423 = vmax.xlane.f32.xlu1 %v422_v47 }
 0x2fd   :  { %v3246_v48 = vpop.f32.mrb[2].mxu1 }
 0x2fe   :  { %v623_v49 = vsel %vm4300_vm3, %v3246_v48, -1e+30  ;;  %v613_v50 = vpop.f32.mrb[3].mxu1 }
 0x2ff   :  { %v622_v51 = vsel %vm4304_vm4, %v613_v50, -1e+30  ;;  %v627_v52 = vsel %vm421_vm5, %v623_v49, -inf }
 0x300   :  { %628 = vmax.xlane.f32.xlu1 %v627_v52  ;;  %v624_v53 = vsel %vm421_vm5, %v622_v51, -inf }
 0x301   :  { %625 = vmax.xlane.f32.xlu0 %v624_v53 }
 0x305   :  { %v3270_v54 = vpop.f32.mrb[4].mxu1 }
 0x306   :  { %v977_v55 = vpop.f32.mrb[5].mxu1  ;;  %v987_v18 = vsel %vm4300_vm3, %v3270_v54, -1e+30 }
 0x307   :  { %v986_v17 = vsel %vm4304_vm4, %v977_v55, -1e+30  ;;  %v991_v21 = vsel %vm421_vm5, %v987_v18, -inf }
 0x308   :  { %v988_v20 = vsel %vm421_vm5, %v986_v17, -inf }
 0x385   :  { %v427_v56 = vpop.xlane.xlu0 %426 }
 0x386   :  { %v429_v57 = vsub.f32 %v420_v43, %v427_v56  ;;  %v424_v58 = vpop.xlane.xlu1 %423 }
 0x387   :  { %v428_v59 = vsub.f32 %v419_v45, %v424_v58  ;;  %v320_v58 = vld [vmem:[#allocation7] sm:$0xff] }
 0x388   :  { %v432_v60 = vmul.f32 1.442695, %v429_v57  ;;  %v321_v57 = vld [vmem:[#allocation7 + $0x8] sm:$0xff] }
 0x389   :  { %v430_v61 = vmul.f32 1.442695, %v428_v59 }
 0x38a   :  { %3645 = vpow2.f32 %v432_v60 }
 0x38b   :  { %3647 = vpow2.f32 %v430_v61 }
 0x38d   :  { %v629_v62 = vpop.xlane.xlu1 %628 }
 0x38e   :  { %v631_v63 = vsub.f32 %v623_v49, %v629_v62  ;;  %v626_v0 = vpop.xlane.xlu0 %625 }
 0x38f   :  { %v630_v1 = vsub.f32 %v622_v51, %v626_v0 }
 0x390   :  { %v634_v2 = vmul.f32 1.442695, %v631_v63 }
 0x391   :  { %v632_v3 = vmul.f32 1.442695, %v630_v1 }
 0x392   :  { %3649 = vpow2.f32 %v634_v2 }
 0x393   :  { %3651 = vpow2.f32 %v632_v3 }
 0x394   :  { %v3646_v4 = vpop.eup %3645 }
 0x395   :  { %v3648_v6 = vpop.eup %3647  ;;  %v437_v8 = vsel %vm421_vm5, %v3646_v4, 0.0 }
 0x396   :  { %438 = vadd.xlane.f32.xlu1 %v437_v8  ;;  %v434_v9 = vsel %vm421_vm5, %v3648_v6, 0.0 }
 0x397   :  { %435 = vadd.xlane.f32.xlu0 %v434_v9 }
 0x39c   :  { %v4322_v10 = vpop.eup %3649 }
 0x39d   :  { %v3652_v11 = vpop.eup %3651  ;;  %v639_v12 = vsel %vm421_vm5, %v4322_v10, 0.0 }
 0x39e   :  { %640 = vadd.xlane.f32.xlu1 %v639_v12  ;;  %v636_v16 = vsel %vm421_vm5, %v3652_v11, 0.0 }
 0x39f   :  { %637 = vadd.xlane.f32.xlu0 %v636_v16 }
 0x3af   :  { %3591 = vrot.lane.b32.xlu1 %v4254_v13, %s3982_s21 }
 0x3b3   :  { %3596 = vrot.lane.b32.xlu1 %v4254_v13, %s3983_s7 }
 0x3b5   :  { %3586 = vrot.lane.b32.xlu0 %v4254_v13, %s3984_s28 }
 0x3b7   :  { %1182 = vrot.lane.b32.xlu1 %v4264_v15, %s3985_s0 }
 0x3b9   :  { %1180 = vrot.lane.b32.xlu0 %v4256_v14, %s3985_s0 }
 0x3d8   :  { %989 = vmax.xlane.f32.xlu0 %v988_v20 }
 0x3db   :  { %992 = vmax.xlane.f32.xlu1 %v991_v21  ;;  %v322_v21 = vld [vmem:[#allocation7 + $0x10] sm:$0xff] }
 0x3ec   :  { %3601 = vrot.lane.b32.xlu1 %v4254_v13, %s3986_s22 }
 0x3f0   :  { %3606 = vrot.lane.b32.xlu1 %v4254_v13, %s3987_s24 }
 0x423   :  { %v439_v14 = vpop.xlane.xlu1 %438 }
 0x424   :  { %v436_v15 = vpop.xlane.xlu0 %435 }
 0x425   :  { %3653 = vrcp.f32 %v436_v15 }
 0x426   :  { %3655 = vrcp.f32 %v439_v14 }
 0x42b   :  { %v641_v22 = vpop.xlane.xlu1 %640 }
 0x42c   :  { %v638_v23 = vpop.xlane.xlu0 %637 }
 0x42d   :  { %3657 = vrcp.f32 %v638_v23 }
 0x42e   :  { %3659 = vrcp.f32 %v641_v22 }
 0x42f   :  { %v3654_v24 = vpop.eup %3653  ;;  %v3592_v25 = vpop.permute.xlu1 %3591 }
 0x430   :  { %v3587_v26 = vpop.permute.xlu0 %3586  ;;  %v442_v27 = vmul.f32 %v3654_v24, %v3648_v6  ;;  %v3594_v28 = vunpack.i.h.bf16 %v3592_v25  ;;  %v3593_v29 = vunpack.i.l.bf16 %v3592_v25  ;;  %v3656_v33 = vpop.eup %3655 }
 0x431   :  { %v3589_v30 = vunpack.i.h.bf16 %v3587_v26  ;;  %v3588_v31 = vunpack.i.l.bf16 %v3587_v26  ;;  %v443_v42 = vmul.f32 %v3656_v33, %v3646_v4 }
 0x432   :  { %3237 = vmatprep.mubr.msk.f32.mxu0 %vm421_vm5, %v442_v27  ;;  %v3442_v37 = vpack.c.bf16 %v3594_v28, %v3593_v29 }
 0x433   :  { %v3432_v32 = vpack.c.bf16 %v3589_v30, %v3588_v31  ;;  %v3597_v13 = vpop.permute.xlu1 %3596 }
 0x434   :  { %v3599_v34 = vunpack.i.h.bf16 %v3597_v13  ;;  %v3598_v35 = vunpack.i.l.bf16 %v3597_v13  ;;  %v1181_v36 = vpop.permute.xlu0 %1180 }
 0x435   :  { %3433 = vmatprep.subr.bf16.mxu0 %v3432_v32  ;;  %3287 = vmatprep.mubr.msk.f32.mxu1 %vm333_vm1, %v1181_v36 }
 0x436   :  { %v3456_v38 = vpack.c.bf16 %v3599_v34, %v3598_v35  ;;  %3435 = vmatpush3.bf16.msra.mxu0 %v3432_v32  ;;  %v323_v35 = vld [vmem:[#allocation7 + $0x18] sm:$0xff] }
 0x437   :  { %v3658_v39 = vpop.eup %3657  ;;  %3443 = vmatprep.subr.bf16.mxu0 %v3442_v37  ;;  %v1183_v46 = vpop.permute.xlu1 %1182 }
 0x438   :  { %v3660_v43 = vpop.eup %3659  ;;  %3458 = vmatprep.subr.msk.bf16.mxu1 %vm4278_vm2, %v3456_v38  ;;  %v644_v44 = vmul.f32 %v3658_v39, %v3652_v11 }
 0x439   :  { %3238 = vmatmul.mubr.msk.f32.vlgmr.msra.gmra.mrb[2].mxu0 %vm421_vm5, %v443_v42  ;;  %3461 = vmatpush3.bf16.xpose.msk.msra.mxu1 %vm4278_vm2, %v3456_v38  ;;  %v645_v45 = vmul.f32 %v3660_v43, %v4322_v10 }
 0x43a   :  { %3445 = vmatpush3.bf16.msra.mxu0 %v3442_v37  ;;  %3251 = vmatprep.mubr.msk.f32.mxu0 %vm421_vm5, %v644_v44  ;;  %v1567_v44 = vld [vmem:[#allocation11] sm:$0xff] }
 0x43b   :  { %3254 = vmatprep.subr.mxu0 %v321_v57 }
 0x43d   :  { %3252 = vmatmul.mubr.msk.f32.vlgmr.msra.gmra.mrb[4].mxu0 %vm421_vm5, %v645_v45  ;;  %v1568_v45 = vld [vmem:[#allocation11 + $0x8] sm:$0xff] }
 0x43e   :  { %3255 = vmatpush3.msra.mxu0 %v321_v57  ;;  %v1477_v57 = vld [vmem:[%s4556_s6 + $0x10] sm:$0xff] }
 0x43f   :  { %3259 = vmatprep.subr.mxu0 %v320_v58 }
 0x440   :  { %3288 = vmatmul.mubr.msk.f32.vlgmr.msra.gmra.mrb[6].mxu1 %vm333_vm1, %v1183_v46  ;;  %v3474_v46 = vpack.c.bf16 %v1568_v45, %v1567_v44 }
 0x465   :  { %v990_v47 = vpop.xlane.xlu0 %989 }
 0x466   :  { %v994_v48 = vsub.f32 %v986_v17, %v990_v47  ;;  %v1475_v47 = vld [vmem:[%s4556_s6] sm:$0xff] }
 0x468   :  { %v996_v49 = vmul.f32 1.442695, %v994_v48  ;;  %v993_v50 = vpop.xlane.xlu1 %992  ;;  %v1476_v48 = vld [vmem:[%s4556_s6 + $0x8] sm:$0xff] }
 0x469   :  { %v995_v51 = vsub.f32 %v987_v18, %v993_v50  ;;  %v1569_v50 = vld [vmem:[#allocation11 + $0x10] sm:$0xff] }
 0x46a   :  { %3661 = vpow2.f32 %v996_v49  ;;  %v3466_v49 = vpack.c.bf16 %v1476_v48, %v1475_v47 }
 0x46b   :  { %v998_v52 = vmul.f32 1.442695, %v995_v51  ;;  %v1570_v51 = vld [vmem:[#allocation11 + $0x18] sm:$0xff] }
 0x46c   :  { %v3602_v60 = vpop.permute.xlu1 %3601  ;;  %3467 = vmatprep.subr.bf16.mxu1 %v3466_v49 }
 0x46d   :  { %3663 = vpow2.f32 %v998_v52  ;;  %v3604_v0 = vunpack.i.h.bf16 %v3602_v60  ;;  %v3603_v1 = vunpack.i.l.bf16 %v3602_v60  ;;  %3469 = vmatpush3.bf16.msra.mxu1 %v3466_v49  ;;  %v3053_v60 = vld [vmem:[#allocation8] ss:$0 sm:$0xff] }
 0x46f   :  { %v3452_v4 = vpack.c.bf16 %v3604_v0, %v3603_v1 }
 0x470   :  { %v3607_v16 = vpop.permute.xlu1 %3606 }
 0x471   :  { %v3609_v15 = vunpack.i.h.bf16 %v3607_v16  ;;  %v3608_v14 = vunpack.i.l.bf16 %v3607_v16 }
 0x473   :  { %v3462_v23 = vpack.c.bf16 %v3609_v15, %v3608_v14 }
 0x474   :  { %v3662_v53 = vpop.eup %3661 }
 0x475   :  { %v1000_v54 = vsel %vm421_vm5, %v3662_v53, 0.0 }
 0x476   :  { %1001 = vadd.xlane.f32.xlu0 %v1000_v54  ;;  %v3478_v54 = vpack.c.bf16 %v1570_v51, %v1569_v50 }
 0x477   :  { %v3664_v55 = vpop.eup %3663 }
 0x478   :  { %v1003_v56 = vsel %vm421_vm5, %v3664_v55, 0.0 }
 0x47a   :  { %1004 = vadd.xlane.f32.xlu0 %v1003_v56  ;;  %v183_v56 = vld [vmem:[#allocation5 + $0x8] sm:$0xff] }
 0x503   :  { %v1002_v59 = vpop.xlane.xlu0 %1001 }
 0x504   :  { %3665 = vrcp.f32 %v1002_v59 }
 0x507   :  { %v1005_v62 = vpop.xlane.xlu0 %1004 }
 0x508   :  { %3667 = vrcp.f32 %v1005_v62 }
 0x50c   :  { %v3239_v61 = vpop.f32.mrb[2].mxu0 }
 0x50d   :  { %v522_v63 = vpop.f32.mrb[3].mxu0 }
 0x50e   :  { %v3666_v11 = vpop.eup %3665 }
 0x50f   :  { %v1008_v20 = vmul.f32 %v3666_v11, %v3662_v53 }
 0x510   :  { %v3253_v2 = vpop.f32.mrb[4].mxu0 }
 0x511   :  { %v724_v3 = vpop.f32.mrb[5].mxu0 }
 0x512   :  { %3256 = vmatprep.mubr.msk.f32.mxu0 %vm333_vm1, %v724_v3  ;;  %v3668_v17 = vpop.eup %3667  ;;  %v3057_v3 = vld [vmem:[#allocation13] ss:$0 sm:$0xff] }
 0x513   :  { %3257 = vmatmul.mubr.msk.f32.vlgmr.msra.gmra.mrb[6].mxu0 %vm333_vm1, %v3253_v2  ;;  %v3289_v6 = vpop.f32.mrb[6].mxu1  ;;  %v1009_v22 = vmul.f32 %v3668_v17, %v3664_v55  ;;  %v182_v55 = vld [vmem:[#allocation5] sm:$0xff]  ;;  %v3054_v17 = vld [vmem:[#allocation10] ss:$0 sm:$0xff] }
 0x514   :  { %3260 = vmatpush3.msra.mxu0 %v320_v58  ;;  %3261 = vmatprep.mubr.msk.f32.mxu0 %vm333_vm1, %v522_v63  ;;  %v1262_v8 = vpop.f32.mrb[7].mxu1  ;;  %v1272_v12 = vsel %vm4300_vm3, %v3289_v6, -1e+30  ;;  %v1478_v58 = vld [vmem:[%s4556_s6 + $0x18] sm:$0xff] }
 0x515   :  { %3453 = vmatprep.subr.bf16.mxu0 %v3452_v4  ;;  %v1271_v9 = vsel %vm4304_vm4, %v1262_v8, -1e+30  ;;  %v1276_v18 = vsel %vm421_vm5, %v1272_v12, -inf  ;;  %v3470_v59 = vpack.c.bf16 %v1478_v58, %v1477_v57 }
 0x516   :  { %v1273_v10 = vsel %vm421_vm5, %v1271_v9, -inf }
 0x517   :  { %1274 = vmax.xlane.f32.xlu0 %v1273_v10  ;;  %3471 = vmatprep.subr.bf16.mxu1 %v3470_v59 }
 0x518   :  { %3473 = vmatpush3.bf16.msra.mxu1 %v3470_v59 }
 0x51b   :  { %1277 = vmax.xlane.f32.xlu0 %v1276_v18  ;;  %3262 = vmatmul.mubr.msk.f32.vlgmr.msra.gmra.mrb[6].mxu0 %vm333_vm1, %v3239_v61 }
 0x51c   :  { %3455 = vmatpush3.bf16.msra.mxu0 %v3452_v4  ;;  %3275 = vmatprep.mubr.msk.f32.mxu0 %vm421_vm5, %v1008_v20 }
 0x51d   :  { %3278 = vmatprep.subr.mxu0 %v322_v21 }
 0x51f   :  { %3276 = vmatmul.mubr.msk.f32.vlgmr.msra.gmra.mrb[8].mxu0 %vm421_vm5, %v1009_v22 }
 0x520   :  { %3279 = vmatpush3.msra.mxu0 %v322_v21 }
 0x521   :  { %3463 = vmatprep.subr.bf16.mxu0 %v3462_v23 }
 0x5a4   :  { %v1275_v24 = vpop.xlane.xlu0 %1274 }
 0x5a5   :  { %v1279_v25 = vsub.f32 %v1271_v9, %v1275_v24 }
 0x5a7   :  { %v1281_v26 = vmul.f32 1.442695, %v1279_v25 }
 0x5a8   :  { %v1278_v27 = vpop.xlane.xlu0 %1277 }
 0x5a9   :  { %3669 = vpow2.f32 %v1281_v26  ;;  %v1280_v28 = vsub.f32 %v1272_v12, %v1278_v27 }
 0x5ab   :  { %v1283_v29 = vmul.f32 1.442695, %v1280_v28 }
 0x5ad   :  { %3671 = vpow2.f32 %v1283_v29 }
 0x5b3   :  { %v3670_v30 = vpop.eup %3669 }
 0x5b4   :  { %v1285_v31 = vsel %vm421_vm5, %v3670_v30, 0.0 }
 0x5b5   :  { %1286 = vadd.xlane.f32.xlu0 %v1285_v31 }
 0x5b7   :  { %v3672_v32 = vpop.eup %3671 }
 0x5b8   :  { %v1288_v13 = vsel %vm421_vm5, %v3672_v32, 0.0 }
 0x5b9   :  { %1289 = vadd.xlane.f32.xlu0 %v1288_v13 }
 0x5f2   :  { %v3277_v33 = vpop.f32.mrb[8].mxu0 }
 0x5f3   :  { %v1088_v34 = vpop.f32.mrb[9].mxu0 }
 0x5f4   :  { %3280 = vmatprep.mubr.msk.f32.mxu0 %vm333_vm1, %v1088_v34 }
 0x5f5   :  { %3281 = vmatmul.mubr.msk.f32.vlgmr.msra.gmra.mrb[6].mxu0 %vm333_vm1, %v3277_v33 }
 0x5f6   :  { %3465 = vmatpush3.bf16.msra.mxu0 %v3462_v23 }
 0x5f7   :  { %3297 = vmatprep.subr.mxu0 %v323_v35 }
 0x642   :  { %v1287_v36 = vpop.xlane.xlu0 %1286 }
 0x643   :  { %3673 = vrcp.f32 %v1287_v36 }
 0x646   :  { %v1290_v37 = vpop.xlane.xlu0 %1289 }
 0x647   :  { %3675 = vrcp.f32 %v1290_v37 }
 0x64d   :  { %v3674_v38 = vpop.eup %3673 }
 0x64e   :  { %v1293_v39 = vmul.f32 %v3674_v38, %v3670_v30 }
 0x650   :  { %3294 = vmatprep.mubr.msk.f32.mxu0 %vm421_vm5, %v1293_v39 }
 0x651   :  { %v3676_v42 = vpop.eup %3675 }
 0x652   :  { %v1294_v43 = vmul.f32 %v3676_v42, %v3672_v32 }
 0x654   :  { %3295 = vmatmul.mubr.msk.f32.vlgmr.msra.gmra.mrb[10].mxu0 %vm421_vm5, %v1294_v43 }
 0x655   :  { %3298 = vmatpush3.msra.mxu0 %v323_v35 }
 0x656   :  { %3475 = vmatprep.subr.bf16.mxu0 %v3474_v46 }
 0x727   :  { %v3296_v52 = vpop.f32.mrb[10].mxu0 }
 0x728   :  { %v1373_v53 = vpop.f32.mrb[11].mxu0 }
 0x729   :  { %3299 = vmatprep.mubr.msk.f32.mxu0 %vm333_vm1, %v1373_v53 }
 0x72a   :  { %3300 = vmatmul.mubr.msk.f32.vlgmr.msra.gmra.mrb[6].mxu0 %vm333_vm1, %v3296_v52 }
 0x72b   :  { %3477 = vmatpush3.bf16.msra.mxu0 %v3474_v46  ;;  %3321 = vmatprep.mubr.msk.f32.mxu0 %vm195_vm0, %v182_v55 }
 0x72c   :  { %3479 = vmatprep.subr.bf16.mxu0 %v3478_v54 }
 0x72f   :  { %3481 = vmatpush3.bf16.msra.mxu0 %v3478_v54 }
 0x732   :  { %3322 = vmatmul.mubr.msk.f32.vlgmr.msra.gmra.mrb[12].mxu0 %vm195_vm0, %v183_v56 }
 0x7fd   :  { %v3301_v61 = vpop.f32.mrb[6].mxu0 }
 0x7fe   :  { %v1472_v62 = vadd.f32 %v3301_v61, %v3053_v60  ;;  %v1454_v63 = vpop.f32.mrb[7].mxu0 }
 0x7ff   :  { %v1471_v0 = vadd.f32 %v3053_v60, %v1454_v63 }
 0x800   :  { %v4394_v2 = vadd.f32 %v1472_v62, %v4247_v7 }
 0x801   :  { %v4391_v1 = vadd.f32 %v1471_v0, %v4243_v5 }
 0x803   :  { %3310 = vmatprep.mubr.msk.f32.mxu1 %vm195_vm0, %v4391_v1 }
 0x804   :  { %3311 = vmatmul.mubr.msk.f32.vlgmr.msra.gmra.mrb[8].mxu1 %vm195_vm0, %v4394_v2 }
 0x805   :  { %v3323_v4 = vpop.f32.mrb[12].mxu0 }
 0x806   :  { %v1656_v6 = vadd.f32 %v3323_v4, %v3057_v3  ;;  %v1650_v8 = vpop.f32.mrb[13].mxu0 }
 0x807   :  { %v1651_v9 = vadd.f32 %v3057_v3, %v1650_v8 }
 0x809   :  { %v4400_v10 = vpack.i.bf16 %v1656_v6, %v1651_v9  ;;  %v3482_v11 = vpack.c.bf16 %v1656_v6, %v1651_v9 }
 0x80b   :  { %3611 = vrot.lane.b32.xlu0 %v4400_v10, %s3978_s25  ;;  %3484 = vmatprep.subr.msk.bf16.mxu1 %vm4278_vm2, %v3482_v11 }
 0x80c   :  { %3487 = vmatpush3.bf16.xpose.msk.msra.mxu1 %vm4278_vm2, %v3482_v11 }
 0x87d   :  { %v3612_v5 = vpop.permute.xlu0 %3611 }
 0x87e   :  { %v3614_v7 = vunpack.i.h.bf16 %v3612_v5  ;;  %v3613_v12 = vunpack.i.l.bf16 %v3612_v5 }
 0x880   :  { %v3492_v16 = vpack.c.bf16 %v3614_v7, %v3613_v12 }
 0x882   :  { %3494 = vmatprep.subr.msk.bf16.mxu1 %vm4278_vm2, %v3492_v16 }
 0x8d7   :  { %v3312_v18 = vpop.f32.mrb[8].mxu1 }
 0x8d8   :  { %v1564_v20 = vadd.f32 %v3312_v18, %v3054_v17  ;;  %v1558_v21 = vpop.f32.mrb[9].mxu1 }
 0x8d9   :  { %v1559_v15 = vadd.f32 %v3054_v17, %v1558_v21 }
 0x8da   :  { %v4412_v22 = vmul.f32 0.35355338, %v1564_v20 }
 0x8db   :  { %v4410_v14 = vmul.f32 0.35355338, %v1559_v15 }
 0x8dd   :  { %1864 = vrot.lane.b32.xlu1 %v4410_v14, %s3978_s25  ;;  %3328 = vmatprep.mubr.msk.f32.mxu1 %vm333_vm1, %v4410_v14 }
 0x8de   :  { %3329 = vmatmul.mubr.msk.f32.vlgmr.msra.gmra.mrb[10].mxu1 %vm333_vm1, %v4412_v22 }
 0x8df   :  { %3497 = vmatpush3.bf16.xpose.msk.msra.mxu1 %vm4278_vm2, %v3492_v16 }
 0x8e1   :  { %1866 = vrot.lane.b32.xlu1 %v4412_v22, %s3978_s25 }
 0x8e5   :  { %3616 = vrot.lane.b32.xlu1 %v4400_v10, %s3981_s8 }
 0x8e9   :  { %2228 = vrot.lane.b32.xlu1 %v4410_v14, %s3981_s8 }
 0x8ed   :  { %2230 = vrot.lane.b32.xlu1 %v4412_v22, %s3981_s8 }
 0x94f   :  { %v1865_v23 = vpop.permute.xlu1 %1864 }
 0x950   :  { %3342 = vmatprep.mubr.msk.f32.mxu1 %vm333_vm1, %v1865_v23 }
 0x953   :  { %v1867_v24 = vpop.permute.xlu1 %1866 }
 0x954   :  { %3343 = vmatmul.mubr.msk.f32.vlgmr.msra.gmra.mrb[12].mxu1 %vm333_vm1, %v1867_v24 }
 0x957   :  { %v3617_v25 = vpop.permute.xlu1 %3616 }
 0x958   :  { %v3619_v26 = vunpack.i.h.bf16 %v3617_v25  ;;  %v3618_v27 = vunpack.i.l.bf16 %v3617_v25 }
 0x95a   :  { %v3502_v28 = vpack.c.bf16 %v3619_v26, %v3618_v27 }
 0x95b   :  { %v2229_v29 = vpop.permute.xlu1 %2228 }
 0x95c   :  { %3504 = vmatprep.subr.msk.bf16.mxu1 %vm4278_vm2, %v3502_v28  ;;  %3366 = vmatprep.mubr.msk.f32.mxu1 %vm333_vm1, %v2229_v29 }
 0x95d   :  { %3507 = vmatpush3.bf16.xpose.msk.msra.mxu1 %vm4278_vm2, %v3502_v28 }
 0x95f   :  { %v2231_v30 = vpop.permute.xlu1 %2230 }
 0x964   :  { %3367 = vmatmul.mubr.msk.f32.vlgmr.msra.gmra.mrb[14].mxu1 %vm333_vm1, %v2231_v30 }
 0x9b1   :  { %v3330_v31 = vpop.f32.mrb[10].mxu1 }
 0x9b2   :  { %v1754_v32 = vsel %vm4300_vm3, %v3330_v31, -1e+30  ;;  %v1744_v13 = vpop.f32.mrb[11].mxu1 }
 0x9b3   :  { %v1753_v33 = vsel %vm4304_vm4, %v1744_v13, -1e+30  ;;  %v1758_v34 = vsel %vm421_vm5, %v1754_v32, -inf }
 0x9b4   :  { %1759 = vmax.xlane.f32.xlu1 %v1758_v34  ;;  %v1755_v35 = vsel %vm421_vm5, %v1753_v33, -inf }
 0x9b5   :  { %1756 = vmax.xlane.f32.xlu0 %v1755_v35 }
 0xa27   :  { %v3344_v36 = vpop.f32.mrb[12].mxu1 }
 0xa28   :  { %v1946_v37 = vpop.f32.mrb[13].mxu1  ;;  %v1956_v42 = vsel %vm4300_vm3, %v3344_v36, -1e+30 }
 0xa29   :  { %v1955_v38 = vsel %vm4304_vm4, %v1946_v37, -1e+30  ;;  %v1960_v43 = vsel %vm421_vm5, %v1956_v42, -inf }
 0xa2a   :  { %v1957_v39 = vsel %vm421_vm5, %v1955_v38, -inf }
 0xa2b   :  { %1958 = vmax.xlane.f32.xlu0 %v1957_v39 }
 0xa2f   :  { %1961 = vmax.xlane.f32.xlu0 %v1960_v43 }
 0xa37   :  { %v3368_v44 = vpop.f32.mrb[14].mxu1 }
 0xa38   :  { %v2310_v45 = vpop.f32.mrb[15].mxu1  ;;  %v2320_v9 = vsel %vm4300_vm3, %v3368_v44, -1e+30 }
 0xa39   :  { %v2319_v11 = vsel %vm4304_vm4, %v2310_v45, -1e+30  ;;  %v2324_v7 = vsel %vm421_vm5, %v2320_v9, -inf }
 0xa3a   :  { %v2321_v5 = vsel %vm421_vm5, %v2319_v11, -inf }
 0xa41   :  { %v1760_v46 = vpop.xlane.xlu1 %1759 }
 0xa42   :  { %v1762_v47 = vsub.f32 %v1754_v32, %v1760_v46  ;;  %v1757_v48 = vpop.xlane.xlu0 %1756 }
 0xa43   :  { %v1761_v49 = vsub.f32 %v1753_v33, %v1757_v48  ;;  %v1659_v48 = vld [vmem:[#allocation14] sm:$0xff] }
 0xa44   :  { %v1765_v50 = vmul.f32 1.442695, %v1762_v47  ;;  %v1660_v47 = vld [vmem:[#allocation14 + $0x8] sm:$0xff] }
 0xa45   :  { %v1763_v51 = vmul.f32 1.442695, %v1761_v49 }
 0xa46   :  { %3677 = vpow2.f32 %v1765_v50 }
 0xa47   :  { %3679 = vpow2.f32 %v1763_v51 }
 0xa50   :  { %v3678_v52 = vpop.eup %3677 }
 0xa51   :  { %v3680_v53 = vpop.eup %3679  ;;  %v1770_v54 = vsel %vm421_vm5, %v3678_v52, 0.0 }
 0xa52   :  { %1771 = vadd.xlane.f32.xlu0 %v1770_v54  ;;  %v1767_v55 = vsel %vm421_vm5, %v3680_v53, 0.0 }
 0xa53   :  { %1768 = vadd.xlane.f32.xlu1 %v1767_v55 }
 0xab8   :  { %v1959_v56 = vpop.xlane.xlu0 %1958 }
 0xab9   :  { %v1963_v57 = vsub.f32 %v1955_v38, %v1959_v56 }
 0xabb   :  { %v1965_v58 = vmul.f32 1.442695, %v1963_v57 }
 0xabc   :  { %v1962_v59 = vpop.xlane.xlu0 %1961 }
 0xabd   :  { %3681 = vpow2.f32 %v1965_v58  ;;  %v1964_v60 = vsub.f32 %v1956_v42, %v1962_v59 }
 0xabf   :  { %v1967_v61 = vmul.f32 1.442695, %v1964_v60 }
 0xac1   :  { %3683 = vpow2.f32 %v1967_v61 }
 0xac7   :  { %v3682_v62 = vpop.eup %3681 }
 0xac8   :  { %v1969_v63 = vsel %vm421_vm5, %v3682_v62, 0.0 }
 0xac9   :  { %1970 = vadd.xlane.f32.xlu1 %v1969_v63 }
 0xacb   :  { %v3684_v0 = vpop.eup %3683 }
 0xacc   :  { %v1972_v3 = vsel %vm421_vm5, %v3684_v0, 0.0 }
 0xacd   :  { %1973 = vadd.xlane.f32.xlu0 %v1972_v3 }
 0xada   :  { %3621 = vrot.lane.b32.xlu1 %v4400_v10, %s3977_s2 }
 0xade   :  { %3631 = vrot.lane.b32.xlu1 %v4400_v10, %s3985_s0 }
 0xadf   :  { %v1772_v12 = vpop.xlane.xlu0 %1771 }
 0xae0   :  { %v1769_v4 = vpop.xlane.xlu1 %1768 }
 0xae1   :  { %3685 = vrcp.f32 %v1769_v4 }
 0xae2   :  { %2513 = vrot.lane.b32.xlu1 %v4410_v14, %s3985_s0  ;;  %3687 = vrcp.f32 %v1772_v12 }
 0xae3   :  { %3626 = vrot.lane.b32.xlu0 %v4400_v10, %s3979_s3 }
 0xae7   :  { %2515 = vrot.lane.b32.xlu0 %v4412_v22, %s3985_s0 }
 0xaeb   :  { %v3686_v6 = vpop.eup %3685 }
 0xaec   :  { %v1775_v8 = vmul.f32 %v3686_v6, %v3680_v53  ;;  %v3688_v14 = vpop.eup %3687 }
 0xaed   :  { %v1776_v29 = vmul.f32 %v3688_v14, %v3678_v52 }
 0xaee   :  { %3335 = vmatprep.mubr.msk.f32.mxu0 %vm421_vm5, %v1775_v8 }
 0xb06   :  { %2322 = vmax.xlane.f32.xlu1 %v2321_v5  ;;  %2325 = vmax.xlane.f32.xlu0 %v2324_v7 }
 0xb56   :  { %v1971_v16 = vpop.xlane.xlu1 %1970 }
 0xb57   :  { %3689 = vrcp.f32 %v1971_v16 }
 0xb5a   :  { %v3622_v17 = vpop.permute.xlu1 %3621  ;;  %v1974_v18 = vpop.xlane.xlu0 %1973 }
 0xb5b   :  { %v3624_v20 = vunpack.i.h.bf16 %v3622_v17  ;;  %v3623_v21 = vunpack.i.l.bf16 %v3622_v17  ;;  %3691 = vrcp.f32 %v1974_v18 }
 0xb5d   :  { %v3488_v15 = vpack.c.bf16 %v3624_v20, %v3623_v21 }
 0xb5e   :  { %v3632_v22 = vpop.permute.xlu1 %3631  ;;  %v3627_v23 = vpop.permute.xlu0 %3626 }
 0xb5f   :  { %v3634_v24 = vunpack.i.h.bf16 %v3632_v22  ;;  %v3633_v25 = vunpack.i.l.bf16 %v3632_v22  ;;  %v3629_v26 = vunpack.i.h.bf16 %v3627_v23  ;;  %v3628_v27 = vunpack.i.l.bf16 %v3627_v23  ;;  %3489 = vmatprep.subr.bf16.mxu0 %v3488_v15 }
 0xb60   :  { %3491 = vmatpush3.bf16.msra.mxu0 %v3488_v15 }
 0xb61   :  { %v3690_v28 = vpop.eup %3689  ;;  %v3512_v30 = vpack.c.bf16 %v3634_v24, %v3633_v25  ;;  %v3498_v31 = vpack.c.bf16 %v3629_v26, %v3628_v27  ;;  %v1662_v27 = vld [vmem:[#allocation14 + $0x18] sm:$0xff] }
 0xb62   :  { %v2514_v32 = vpop.permute.xlu1 %2513  ;;  %v1977_v13 = vmul.f32 %v3690_v28, %v3682_v62  ;;  %v2516_v35 = vpop.permute.xlu0 %2515 }
 0xb63   :  { %3336 = vmatmul.mubr.msk.f32.vlgmr.msra.gmra.mrb[14].mxu0 %vm421_vm5, %v1776_v29  ;;  %3499 = vmatprep.subr.bf16.mxu0 %v3498_v31 }
 0xb64   :  { %3514 = vmatprep.subr.msk.bf16.mxu1 %vm4278_vm2, %v3512_v30  ;;  %3385 = vmatprep.mubr.msk.f32.mxu1 %vm333_vm1, %v2514_v32  ;;  %v2809_v32 = vld [vmem:[%s4562_s12 + $0x8] sm:$0xff] }
 0xb65   :  { %v3692_v33 = vpop.eup %3691  ;;  %3501 = vmatpush3.bf16.msra.mxu0 %v3498_v31  ;;  %3349 = vmatprep.mubr.msk.f32.mxu0 %vm421_vm5, %v1977_v13  ;;  %v2808_v31 = vld [vmem:[%s4562_s12] sm:$0xff] }
 0xb66   :  { %v1978_v34 = vmul.f32 %v3692_v33, %v3684_v0  ;;  %3517 = vmatpush3.bf16.xpose.msk.msra.mxu1 %vm4278_vm2, %v3512_v30  ;;  %3352 = vmatprep.subr.mxu0 %v1660_v47  ;;  %v3522_v13 = vpack.c.bf16 %v2809_v32, %v2808_v31 }
 0xb68   :  { %3350 = vmatmul.mubr.msk.f32.vlgmr.msra.gmra.mrb[16].mxu0 %vm421_vm5, %v1978_v34  ;;  %3523 = vmatprep.subr.bf16.mxu1 %v3522_v13 }
 0xb69   :  { %3353 = vmatpush3.msra.mxu0 %v1660_v47  ;;  %v2903_v47 = vld [vmem:[%s4564_s14 + $0x8] sm:$0xff] }
 0xb6a   :  { %3357 = vmatprep.subr.mxu0 %v1659_v48 }
 0xb6d   :  { %3386 = vmatmul.mubr.msk.f32.vlgmr.msra.gmra.mrb[16].mxu1 %vm333_vm1, %v2516_v35  ;;  %v2810_v35 = vld [vmem:[%s4562_s12 + $0x10] sm:$0xff] }
 0xb6e   :  { %3525 = vmatpush3.bf16.msra.mxu1 %v3522_v13 }
 0xb93   :  { %v2323_v36 = vpop.xlane.xlu1 %2322  ;;  %v2326_v37 = vpop.xlane.xlu0 %2325 }
 0xb94   :  { %v2327_v38 = vsub.f32 %v2319_v11, %v2323_v36  ;;  %v2328_v39 = vsub.f32 %v2320_v9, %v2326_v37  ;;  %v2811_v36 = vld [vmem:[%s4562_s12 + $0x18] sm:$0xff] }
 0xb95   :  { %v3526_v37 = vpack.c.bf16 %v2811_v36, %v2810_v35 }
 0xb96   :  { %v2329_v42 = vmul.f32 1.442695, %v2327_v38  ;;  %v2331_v43 = vmul.f32 1.442695, %v2328_v39  ;;  %v3092_v38 = vld [vmem:[#allocation16] ss:$0 sm:$0xff] }
 0xb97   :  { %3527 = vmatprep.subr.bf16.mxu1 %v3526_v37 }
 0xb98   :  { %3693 = vpow2.f32 %v2329_v42  ;;  %3529 = vmatpush3.bf16.msra.mxu1 %v3526_v37 }
 0xb99   :  { %3695 = vpow2.f32 %v2331_v43 }
 0xba2   :  { %v3694_v44 = vpop.eup %3693 }
 0xba3   :  { %v3696_v45 = vpop.eup %3695  ;;  %v2333_v46 = vsel %vm421_vm5, %v3694_v44, 0.0 }
 0xba4   :  { %2334 = vadd.xlane.f32.xlu0 %v2333_v46  ;;  %v2336_v19 = vsel %vm421_vm5, %v3696_v45, 0.0 }
 0xba5   :  { %2337 = vadd.xlane.f32.xlu1 %v2336_v19  ;;  %v2902_v19 = vld [vmem:[%s4564_s14] sm:$0xff]  ;;  %s3988_s14 = smov [#allocation19]  }
 0xba6   :  { %s3001_s28 = sshll.u32 %s3988_s14, 4  ;;  %s3002_s28 = int_to_ptr.vmem [resolvable:$true] %s3001_s28 }
 0xba7   :  { %s3929_s0 = scalar_lea.vmem %s3002_s28, 256  ;;  %p3934_p11 = scmp.lt.s32.totalorder %s3002_s28, %s3002_s28 }
 0xba8   :  { %p3930_p10 = scmp.ne.s32.totalorder %s3002_s28, %s3929_s0  ;;  %p3935_p12 = scmp.lt.s32.totalorder %s3929_s0, %s3929_s0 }
 0xbaa   :  { %p3936_p13 = por %p3935_p12, %p3934_p11 }
 0xbac   :  { %p3937_p0 = pnand %p3936_p13, %p3930_p10 }
 0xbba   :  { %3636 = vrot.lane.b32.xlu0 %v4400_v10, %s3980_s30 }
 0xc31   :  { %v2335_v49 = vpop.xlane.xlu0 %2334 }
 0xc32   :  { %v2338_v53 = vpop.xlane.xlu1 %2337  ;;  %3697 = vrcp.f32 %v2335_v49  ;;  %v3093_v49 = vld [vmem:[#allocation17] ss:$0 sm:$0xff] }
 0xc33   :  { %3699 = vrcp.f32 %v2338_v53 }
 0xc35   :  { %v3637_v51 = vpop.permute.xlu0 %3636 }
 0xc36   :  { %v3337_v50 = vpop.f32.mrb[14].mxu0  ;;  %v3639_v54 = vunpack.i.h.bf16 %v3637_v51  ;;  %v3638_v55 = vunpack.i.l.bf16 %v3637_v51 }
 0xc37   :  { %v1855_v52 = vpop.f32.mrb[15].mxu0 }
 0xc38   :  { %v3508_v58 = vpack.c.bf16 %v3639_v54, %v3638_v55  ;;  %v3096_v54 = vld [vmem:[%s4565_s15] ss:$0 sm:$0xff] }
 0xc3b   :  { %v3351_v56 = vpop.f32.mrb[16].mxu0 }
 0xc3c   :  { %v2057_v57 = vpop.f32.mrb[17].mxu0  ;;  %v3698_v61 = vpop.eup %3697 }
 0xc3d   :  { %3354 = vmatprep.mubr.msk.f32.mxu0 %vm333_vm1, %v2057_v57  ;;  %v3700_v3 = vpop.eup %3699  ;;  %v2341_v4 = vmul.f32 %v3698_v61, %v3694_v44 }
 0xc3e   :  { %3355 = vmatmul.mubr.msk.f32.vlgmr.msra.gmra.mrb[18].mxu0 %vm333_vm1, %v3351_v56  ;;  %v2342_v8 = vmul.f32 %v3700_v3, %v3696_v45 }
 0xc3f   :  { %3358 = vmatpush3.msra.mxu0 %v1659_v48  ;;  %3359 = vmatprep.mubr.msk.f32.mxu0 %vm333_vm1, %v1855_v52  ;;  %v3530_v48 = vpack.c.bf16 %v2903_v47, %v2902_v19 }
 0xc40   :  { %v3387_v59 = vpop.f32.mrb[16].mxu1  ;;  %3509 = vmatprep.subr.bf16.mxu0 %v3508_v58 }
 0xc41   :  { %v2595_v60 = vpop.f32.mrb[17].mxu1  ;;  %v2605_v0 = vsel %vm4300_vm3, %v3387_v59, -1e+30 }
 0xc42   :  { %v2604_v62 = vsel %vm4304_vm4, %v2595_v60, -1e+30  ;;  %v2609_v6 = vsel %vm421_vm5, %v2605_v0, -inf }
 0xc43   :  { %v2606_v63 = vsel %vm421_vm5, %v2604_v62, -inf }
 0xc44   :  { %2607 = vmax.xlane.f32.xlu1 %v2606_v63 }
 0xc46   :  { %3360 = vmatmul.mubr.msk.f32.vlgmr.msra.gmra.mrb[18].mxu0 %vm333_vm1, %v3337_v50 }
 0xc47   :  { %3511 = vmatpush3.bf16.msra.mxu0 %v3508_v58  ;;  %3373 = vmatprep.mubr.msk.f32.mxu0 %vm421_vm5, %v2341_v4 }
 0xc48   :  { %2610 = vmax.xlane.f32.xlu1 %v2609_v6  ;;  %3376 = vmatprep.subr.mxu0 %v1661_v41 }
 0xc4a   :  { %3374 = vmatmul.mubr.msk.f32.vlgmr.msra.gmra.mrb[20].mxu0 %vm421_vm5, %v2342_v8 }
 0xc4b   :  { %3377 = vmatpush3.msra.mxu0 %v1661_v41 }
 0xcd1   :  { %v2608_v9 = vpop.xlane.xlu1 %2607 }
 0xcd2   :  { %v2612_v40 = vsub.f32 %v2604_v62, %v2608_v9 }
 0xcd4   :  { %v2614_v7 = vmul.f32 1.442695, %v2612_v40 }
 0xcd5   :  { %v2611_v11 = vpop.xlane.xlu1 %2610 }
 0xcd6   :  { %v2613_v5 = vsub.f32 %v2605_v0, %v2611_v11 }
 0xcd8   :  { %v2616_v12 = vmul.f32 1.442695, %v2613_v5 }
 0xcda   :  { %3701 = vpow2.f32 %v2616_v12 }
 0xcdb   :  { %3703 = vpow2.f32 %v2614_v7 }
 0xce4   :  { %v3702_v16 = vpop.eup %3701 }
 0xce5   :  { %v2621_v17 = vsel %vm421_vm5, %v3702_v16, 0.0  ;;  %v3704_v18 = vpop.eup %3703 }
 0xce6   :  { %2622 = vadd.xlane.f32.xlu1 %v2621_v17  ;;  %v2618_v20 = vsel %vm421_vm5, %v3704_v18, 0.0 }
 0xcea   :  { %2619 = vadd.xlane.f32.xlu1 %v2618_v20 }
 0xcfb   :  { %3641 = vrot.lane.b32.xlu1 %v4400_v10, %s3983_s7 }
 0xd1d   :  { %v3375_v21 = vpop.f32.mrb[20].mxu0 }
 0xd1e   :  { %v2421_v15 = vpop.f32.mrb[21].mxu0 }
 0xd1f   :  { %3378 = vmatprep.mubr.msk.f32.mxu0 %vm333_vm1, %v2421_v15 }
 0xd20   :  { %3379 = vmatmul.mubr.msk.f32.vlgmr.msra.gmra.mrb[18].mxu0 %vm333_vm1, %v3375_v21 }
 0xd73   :  { %v2623_v14 = vpop.xlane.xlu1 %2622 }
 0xd74   :  { %3705 = vrcp.f32 %v2623_v14 }
 0xd77   :  { %v2620_v22 = vpop.xlane.xlu1 %2619 }
 0xd78   :  { %3707 = vrcp.f32 %v2620_v22 }
 0xd7b   :  { %v3642_v23 = vpop.permute.xlu1 %3641 }
 0xd7c   :  { %v3644_v24 = vunpack.i.h.bf16 %v3642_v23  ;;  %v3643_v25 = vunpack.i.l.bf16 %v3642_v23 }
 0xd7e   :  { %v3518_v26 = vpack.c.bf16 %v3644_v24, %v3643_v25  ;;  %v3706_v28 = vpop.eup %3705 }
 0xd7f   :  { %v2627_v30 = vmul.f32 %v3706_v28, %v3702_v16 }
 0xd80   :  { %3519 = vmatprep.subr.bf16.mxu0 %v3518_v26 }
 0xd81   :  { %3521 = vmatpush3.bf16.msra.mxu0 %v3518_v26 }
 0xd82   :  { %v3708_v29 = vpop.eup %3707  ;;  %3395 = vmatprep.subr.mxu0 %v1662_v27 }
 0xd83   :  { %v2626_v10 = vmul.f32 %v3708_v29, %v3704_v18 }
 0xd85   :  { %3392 = vmatprep.mubr.msk.f32.mxu0 %vm421_vm5, %v2626_v10 }
 0xd86   :  { %3393 = vmatmul.mubr.msk.f32.vlgmr.msra.gmra.mrb[22].mxu0 %vm421_vm5, %v2627_v30 }
 0xd87   :  { %3396 = vmatpush3.msra.mxu0 %v1662_v27 }
 0xd88   :  { %3531 = vmatprep.subr.bf16.mxu0 %v3530_v48 }
 0xe59   :  { %v3394_v33 = vpop.f32.mrb[22].mxu0 }
 0xe5a   :  { %v2706_v34 = vpop.f32.mrb[23].mxu0 }
 0xe5b   :  { %3397 = vmatprep.mubr.msk.f32.mxu0 %vm333_vm1, %v2706_v34 }
 0xe5c   :  { %3398 = vmatmul.mubr.msk.f32.vlgmr.msra.gmra.mrb[18].mxu0 %vm333_vm1, %v3394_v33 }
 0xe5d   :  { %3533 = vmatpush3.bf16.msra.mxu0 %v3530_v48 }
 0xf2f   :  { %v3399_v39 = vpop.f32.mrb[18].mxu0 }
 0xf30   :  { %v2805_v42 = vadd.f32 %v3399_v39, %v3092_v38  ;;  %v2787_v43 = vpop.f32.mrb[19].mxu0 }
 0xf31   :  { %v2804_v44 = vadd.f32 %v3092_v38, %v2787_v43 }
 0xf32   :  { %v2807_v46 = vadd.f32 %v2805_v42, %v4394_v2 }
 0xf33   :  { %v2806_v45 = vadd.f32 %v2804_v44, %v4391_v1 }
 0xf35   :  { %3408 = vmatprep.mubr.msk.f32.mxu1 %vm195_vm0, %v2806_v45 }
 0xf36   :  { %3409 = vmatmul.mubr.msk.f32.vlgmr.msra.gmra.mrb[18].mxu1 %vm195_vm0, %v2807_v46 }
0x1009   :  { %v3410_v50 = vpop.f32.mrb[18].mxu1 }
0x100a   :  { %v2897_v1 = vadd.f32 %v3410_v50, %v3093_v49  ;;  %v2891_v51 = vpop.f32.mrb[19].mxu1 }
0x100b   :  { %v2892_v2 = vadd.f32 %v3093_v49, %v2891_v51 }
0x100c   :  { %v2901_v53 = vmax.f32 %v2897_v1, 0.0 }
0x100d   :  { %v2900_v52 = vmax.f32 %v2892_v2, 0.0 }
0x100f   :  { %3415 = vmatprep.mubr.msk.f32.mxu0 %vm421_vm5, %v2900_v52 }
0x1010   :  { %3416 = vmatmul.mubr.msk.f32.vlgmr.msra.gmra.mrb[24].mxu0 %vm421_vm5, %v2901_v53 }
0x10e3   :  { %v3417_v55 = vpop.f32.mrb[24].mxu0 }
0x10e4   :  { %v2989_v56 = vadd.f32 %v3417_v55, %v3096_v54  ;;  %v2983_v57 = vpop.f32.mrb[25].mxu0 }
0x10e5   :  { %v2984_v58 = vadd.f32 %v3096_v54, %v2983_v57 }
0x10e6   :  { %v2993_v59 = vadd.f32 %v2989_v56, %v2807_v46 }
0x10e7   :  { %v2992_v60 = vadd.f32 %v2984_v58, %v2806_v45 }
0x10e8   :  { %2995 = vst.msk [vmem:[#allocation19 + $0x8] sm:$0xff] %vm195_vm0, %v2993_v59 }
0x10e9   :  { %2994 = vst.msk [vmem:[#allocation19] sm:$0xff] %vm195_vm0, %v2992_v60 }
0x10ea   :  { %3940 = shalt.err (!%p3937_p0)
}
0x10eb   :  { %s3941_s24 = scalar_lea.hbm %s4566_s16, 256 }
0x10ec   :  { %p3942_p1 = scmp.ne.s32.totalorder %s4566_s16, %s3941_s24  ;;  %p3945_p2 = scmp.lt.u32.totalorder %s3941_s24, %s4566_s16 }
0x10ee   :  { %p3947_p3 = pnand %p3945_p2, %p3942_p1 }
0x10f0   :  { %3950 = shalt.err (!%p3947_p3)
}
0x10f1   :  { %3007 = dma.vmem_to_hbm [thread:$0]  %s3002_s28, 256, %s4566_s16, [#allocation4], %s3967_s18, %s3967_s18, %s3968_s19  }
0x10f2   :  { %3963 = dma.done.wait [#allocation4], 256  }
0x10f3   :  { %3964 = vsyncadd [#allocation4], 4294967040 }
0x10f4   :  { %3011 = vsyncpa [#allocation3], 1 }
0x10f5   :  { %3012 = vsyncpa [#allocation6], 1 }
0x10f6   :  { %3013 = vsyncpa [#allocation9], 1 }
0x10f7   :  { %3014 = vsyncpa [#allocation12], 1 }
0x10f8   :  { %3015 = vsyncpa [#allocation15], 1 }
0x10f9   :  { %3016 = vsyncpa [#allocation18], 1 }
0x10fa   :  { %3017 = vsyncpa [#allocation4], 1 }

</bundles_post_ra>
